<compile_context>
chip_gen: v7x
topology: tpu7x:2x2x1
jax: 0.10.0
libtpu: 0.0.40
codegen_flags: <defaults>
</compile_context>

<pallas_src>
import functools

import jax
import jax.numpy as jnp
import numpy as np
from jax.experimental import pallas as pl
from jax.experimental.pallas import tpu as pltpu


def _lstm_fc_kernel(x_ref, wih_ref, whh_ref, b_ref, wfc_ref, bfc_ref, out_ref,
                    *, hidden_size, seq_len):
    """One batch tile of: LSTM(T steps, h0=c0=0) -> ReLU(h_T) -> Linear.

    x_ref:   (T, TB, D)  time-major batch tile
    wih_ref: (D, 4H)     input->gate weights, gate order [i, f, o, g]
    whh_ref: (H, 4H)     hidden->gate weights, gate order [i, f, o, g]
    b_ref:   (1, 4H)     b_ih + b_hh (reordered)
    wfc_ref: (H, O)      final Linear weight (transposed)
    bfc_ref: (1, O)      final Linear bias
    out_ref: (TB, O)
    """
    H = hidden_size
    T = seq_len
    TB = x_ref.shape[1]

    wih = wih_ref[...]
    bias = b_ref[...]
    whh = whh_ref[...]          # loaded once, reused every recurrence step

    # ---- Prologue: input projection for ALL timesteps (independent of h -> off the
    #      serial path; scheduler can overlap these MXU pushes with recurrence work). ----
    pre = [
        jnp.dot(x_ref[t], wih, preferred_element_type=jnp.float32) + bias   # (TB, 4H)
        for t in range(T)
    ]

    h = jnp.zeros((TB, H), jnp.float32)      # h_0 = 0 (matches forward())
    c = jnp.zeros((TB, H), jnp.float32)      # c_0 = 0

    # ---- Serial recurrence, fully unrolled (T static). h/c live in vregs. ----
    # Gate lanes are [i | f | o | g]: one sigmoid over 3H contiguous lanes, one tanh over H.
    for t in range(T):
        gates = pre[t] + jnp.dot(h, whh, preferred_element_type=jnp.float32)  # (TB, 4H)
        sig = jax.nn.sigmoid(gates[:, :3 * H])     # one EUP push: i, f, o
        g_g = jnp.tanh(gates[:, 3 * H:])           # one EUP push: g
        i_g = sig[:, 0 * H:1 * H]
        f_g = sig[:, 1 * H:2 * H]
        o_g = sig[:, 2 * H:3 * H]
        c = f_g * c + i_g * g_g
        h = o_g * jnp.tanh(c)

    # ---- hn -> ReLU -> fc ----
    hn = jnp.maximum(h, 0.0)                                                   # (TB, H)
    out_ref[...] = (
        jnp.dot(hn, wfc_ref[...], preferred_element_type=jnp.float32) + bfc_ref[...]
    )


def _reorder_gates(w, H):
    """Permute PyTorch's stacked gate axis [i, f, g, o] -> [i, f, o, g] (leading axis)."""
    return jnp.concatenate([w[0:2 * H], w[3 * H:4 * H], w[2 * H:3 * H]], axis=0)


def custom_lstm_forward(x_btd, w_ih, w_hh, b_ih, b_hh, w_fc, b_fc, *, batch_tile=8):
    """x_btd: (B, T, D) float32. Weights in PyTorch layout:
       w_ih (4H, D), w_hh (4H, H), b_ih (4H,), b_hh (4H,), w_fc (O, H), b_fc (O,)."""
    B, T, D = x_btd.shape
    H = w_hh.shape[1]
    O = w_fc.shape[0]

    TB = batch_tile
    if B % TB != 0:
        TB = B                       # fall back to a single batch tile

    # Time-major for the kernel; batch is the tiled / parallel grid axis.
    x_tbd = jnp.transpose(x_btd, (1, 0, 2)).astype(jnp.float32)              # (T, B, D)

    # Reorder gates [i,f,g,o] -> [i,f,o,g], fold the two biases, pre-transpose for the MXU.
    wih_t = jnp.transpose(_reorder_gates(w_ih.astype(jnp.float32), H))       # (D, 4H)
    whh_t = jnp.transpose(_reorder_gates(w_hh.astype(jnp.float32), H))       # (H, 4H)
    b = _reorder_gates((b_ih + b_hh).astype(jnp.float32), H).reshape(1, 4 * H)
    wfc_t = jnp.transpose(w_fc).astype(jnp.float32)                          # (H, O)
    bfc = b_fc.reshape(1, O).astype(jnp.float32)                             # (1, O)

    kernel = functools.partial(_lstm_fc_kernel, hidden_size=H, seq_len=T)

    grid = (B // TB,)
    return pl.pallas_call(
        kernel,
        out_shape=jax.ShapeDtypeStruct((B, O), jnp.float32),
        grid_spec=pltpu.PrefetchScalarGridSpec(
            num_scalar_prefetch=0,
            grid=grid,
            in_specs=[
                pl.BlockSpec((T, TB, D), lambda bi: (0, bi, 0)),   # batch tile of x
                pl.BlockSpec((D, 4 * H), lambda bi: (0, 0)),       # weights: same block every
                pl.BlockSpec((H, 4 * H), lambda bi: (0, 0)),       # step -> fetched once
                pl.BlockSpec((1, 4 * H), lambda bi: (0, 0)),
                pl.BlockSpec((H, O), lambda bi: (0, 0)),
                pl.BlockSpec((1, O), lambda bi: (0, 0)),
            ],
            out_specs=pl.BlockSpec((TB, O), lambda bi: (bi, 0)),
        ),
        compiler_params=pltpu.CompilerParams(
            dimension_semantics=("parallel",)),
    )(x_tbd, wih_t, whh_t, b, wfc_t, bfc)
    # TODO(synk): for large H / long T, cast the matmul operands to bf16 (keep c/h and the
    # elementwise gate math in f32) and tile T with an "arbitrary" grid axis if the per-tile
    # pre-gate activations exceed VMEM.


def _reference_forward(x_btd, w_ih, w_hh, b_ih, b_hh, w_fc, b_fc):
    """Pure-JAX reference matching PyTorch nn.LSTM semantics (gate order i,f,g,o)."""
    B, T, D = x_btd.shape
    H = w_hh.shape[1]
    h = jnp.zeros((B, H), jnp.float32)
    c = jnp.zeros((B, H), jnp.float32)
    for t in range(T):
        gates = x_btd[:, t, :] @ w_ih.T + h @ w_hh.T + b_ih + b_hh
        i_g = jax.nn.sigmoid(gates[:, 0 * H:1 * H])
        f_g = jax.nn.sigmoid(gates[:, 1 * H:2 * H])
        g_g = jnp.tanh(gates[:, 2 * H:3 * H])
        o_g = jax.nn.sigmoid(gates[:, 3 * H:4 * H])
        c = f_g * c + i_g * g_g
        h = o_g * jnp.tanh(c)
    hn = jnp.maximum(h, 0.0)
    return hn @ w_fc.T + b_fc


if __name__ == "__main__":
    # Small shapes consistent with the module's forward: (batch, seq, input_size).
    # H chosen lane-aligned (128, close to the module's 130); batch exercises 2 grid tiles.
    B, T, D, H, O = 16, 8, 16, 128, 1

    key = jax.random.PRNGKey(0)
    keys = jax.random.split(key, 8)
    bound = 1.0 / np.sqrt(H)  # PyTorch default init scale for LSTM / Linear

    x = jax.random.normal(keys[0], (B, T, D), dtype=jnp.float32)
    w_ih = jax.random.uniform(keys[1], (4 * H, D), minval=-bound, maxval=bound, dtype=jnp.float32)
    w_hh = jax.random.uniform(keys[2], (4 * H, H), minval=-bound, maxval=bound, dtype=jnp.float32)
    b_ih = jax.random.uniform(keys[3], (4 * H,), minval=-bound, maxval=bound, dtype=jnp.float32)
    b_hh = jax.random.uniform(keys[4], (4 * H,), minval=-bound, maxval=bound, dtype=jnp.float32)
    w_fc = jax.random.uniform(keys[5], (O, H), minval=-bound, maxval=bound, dtype=jnp.float32)
    b_fc = jax.random.uniform(keys[6], (O,), minval=-bound, maxval=bound, dtype=jnp.float32)

    out = custom_lstm_forward(x, w_ih, w_hh, b_ih, b_hh, w_fc, b_fc, batch_tile=8)
    out = jax.block_until_ready(out)

    ref = _reference_forward(x, w_ih, w_hh, b_ih, b_hh, w_fc, b_fc)
    np.testing.assert_allclose(np.asarray(out), np.asarray(ref), rtol=1e-3, atol=1e-4)

    assert out.shape == (B, O) and out.dtype == jnp.float32
    print("KERNEL_OK")
</pallas_src>

<mosaic_0001>
module attributes {stable_mosaic.version = 11 : i64} {
  func.func @_lstm_fc_kernel(%arg0: i32, %arg1: memref<8x8x16xf32, #tpu.memory_space<vmem>>, %arg2: memref<16x512xf32, #tpu.memory_space<vmem>>, %arg3: memref<128x512xf32, #tpu.memory_space<vmem>>, %arg4: memref<1x512xf32, #tpu.memory_space<vmem>>, %arg5: memref<128x1xf32, #tpu.memory_space<vmem>>, %arg6: memref<1x1xf32, #tpu.memory_space<vmem>>, %arg7: memref<8x1xf32, #tpu.memory_space<vmem>>) attributes {dimension_semantics = [#tpu.dimension_semantics<parallel>], iteration_bounds = array<i64: 2>, scalar_prefetch = 0 : i64, scratch_operands = 0 : i64, tpu.core_type = #tpu.core_type<tc>, window_params = [{transform_indices = @transform_0, window_bounds = array<i64: 8, 8, 16>}, {pipeline_mode = #tpu.pipeline_mode<synchronous>, transform_indices = @transform_1, window_bounds = array<i64: 16, 512>}, {pipeline_mode = #tpu.pipeline_mode<synchronous>, transform_indices = @transform_2, window_bounds = array<i64: 128, 512>}, {pipeline_mode = #tpu.pipeline_mode<synchronous>, transform_indices = @transform_3, window_bounds = array<i64: 1, 512>}, {pipeline_mode = #tpu.pipeline_mode<synchronous>, transform_indices = @transform_4, window_bounds = array<i64: 128, 1>}, {pipeline_mode = #tpu.pipeline_mode<synchronous>, transform_indices = @transform_5, window_bounds = array<i64: 1, 1>}, {transform_indices = @transform_6, window_bounds = array<i64: 8, 1>}]} {
    %c0 = arith.constant 0 : index
    %c0_0 = arith.constant 0 : index
    %0 = vector.load %arg2[%c0, %c0_0] : memref<16x512xf32, #tpu.memory_space<vmem>>, vector<16x512xf32>
    %c0_1 = arith.constant 0 : index
    %c0_2 = arith.constant 0 : index
    %1 = vector.load %arg4[%c0_1, %c0_2] : memref<1x512xf32, #tpu.memory_space<vmem>>, vector<1x512xf32>
    %c0_3 = arith.constant 0 : index
    %c0_4 = arith.constant 0 : index
    %2 = vector.load %arg3[%c0_3, %c0_4] : memref<128x512xf32, #tpu.memory_space<vmem>>, vector<128x512xf32>
    %c0_5 = arith.constant 0 : index
    %c0_6 = arith.constant 0 : index
    %c0_7 = arith.constant 0 : index
    %3 = vector.load %arg1[%c0_5, %c0_6, %c0_7] : memref<8x8x16xf32, #tpu.memory_space<vmem>>, vector<1x8x16xf32>
    %4 = vector.shape_cast %3 : vector<1x8x16xf32> to vector<8x16xf32>
    %cst = arith.constant dense<0.000000e+00> : vector<8x512xf32>
    %5 = tpu.matmul %4, %0, %cst {dimension_numbers = #tpu.dot_dimension_numbers<[1], [0], [0], [1], [0, 0, 1, 1], [], []>} : vector<8x16xf32>, vector<16x512xf32>, vector<8x512xf32> -> vector<8x512xf32>
    %6 = vector.broadcast %1 : vector<1x512xf32> to vector<8x512xf32>
    %7 = arith.addf %5, %6 : vector<8x512xf32>
    %c1 = arith.constant 1 : index
    %c0_8 = arith.constant 0 : index
    %c0_9 = arith.constant 0 : index
    %8 = vector.load %arg1[%c1, %c0_8, %c0_9] : memref<8x8x16xf32, #tpu.memory_space<vmem>>, vector<1x8x16xf32>
    %9 = vector.shape_cast %8 : vector<1x8x16xf32> to vector<8x16xf32>
    %cst_10 = arith.constant dense<0.000000e+00> : vector<8x512xf32>
    %10 = tpu.matmul %9, %0, %cst_10 {dimension_numbers = #tpu.dot_dimension_numbers<[1], [0], [0], [1], [0, 0, 1, 1], [], []>} : vector<8x16xf32>, vector<16x512xf32>, vector<8x512xf32> -> vector<8x512xf32>
    %11 = vector.broadcast %1 : vector<1x512xf32> to vector<8x512xf32>
    %12 = arith.addf %10, %11 : vector<8x512xf32>
    %c2 = arith.constant 2 : index
    %c0_11 = arith.constant 0 : index
    %c0_12 = arith.constant 0 : index
    %13 = vector.load %arg1[%c2, %c0_11, %c0_12] : memref<8x8x16xf32, #tpu.memory_space<vmem>>, vector<1x8x16xf32>
    %14 = vector.shape_cast %13 : vector<1x8x16xf32> to vector<8x16xf32>
    %cst_13 = arith.constant dense<0.000000e+00> : vector<8x512xf32>
    %15 = tpu.matmul %14, %0, %cst_13 {dimension_numbers = #tpu.dot_dimension_numbers<[1], [0], [0], [1], [0, 0, 1, 1], [], []>} : vector<8x16xf32>, vector<16x512xf32>, vector<8x512xf32> -> vector<8x512xf32>
    %16 = vector.broadcast %1 : vector<1x512xf32> to vector<8x512xf32>
    %17 = arith.addf %15, %16 : vector<8x512xf32>
    %c3 = arith.constant 3 : index
    %c0_14 = arith.constant 0 : index
    %c0_15 = arith.constant 0 : index
    %18 = vector.load %arg1[%c3, %c0_14, %c0_15] : memref<8x8x16xf32, #tpu.memory_space<vmem>>, vector<1x8x16xf32>
    %19 = vector.shape_cast %18 : vector<1x8x16xf32> to vector<8x16xf32>
    %cst_16 = arith.constant dense<0.000000e+00> : vector<8x512xf32>
    %20 = tpu.matmul %19, %0, %cst_16 {dimension_numbers = #tpu.dot_dimension_numbers<[1], [0], [0], [1], [0, 0, 1, 1], [], []>} : vector<8x16xf32>, vector<16x512xf32>, vector<8x512xf32> -> vector<8x512xf32>
    %21 = vector.broadcast %1 : vector<1x512xf32> to vector<8x512xf32>
    %22 = arith.addf %20, %21 : vector<8x512xf32>
    %c4 = arith.constant 4 : index
    %c0_17 = arith.constant 0 : index
    %c0_18 = arith.constant 0 : index
    %23 = vector.load %arg1[%c4, %c0_17, %c0_18] : memref<8x8x16xf32, #tpu.memory_space<vmem>>, vector<1x8x16xf32>
    %24 = vector.shape_cast %23 : vector<1x8x16xf32> to vector<8x16xf32>
    %cst_19 = arith.constant dense<0.000000e+00> : vector<8x512xf32>
    %25 = tpu.matmul %24, %0, %cst_19 {dimension_numbers = #tpu.dot_dimension_numbers<[1], [0], [0], [1], [0, 0, 1, 1], [], []>} : vector<8x16xf32>, vector<16x512xf32>, vector<8x512xf32> -> vector<8x512xf32>
    %26 = vector.broadcast %1 : vector<1x512xf32> to vector<8x512xf32>
    %27 = arith.addf %25, %26 : vector<8x512xf32>
    %c5 = arith.constant 5 : index
    %c0_20 = arith.constant 0 : index
    %c0_21 = arith.constant 0 : index
    %28 = vector.load %arg1[%c5, %c0_20, %c0_21] : memref<8x8x16xf32, #tpu.memory_space<vmem>>, vector<1x8x16xf32>
    %29 = vector.shape_cast %28 : vector<1x8x16xf32> to vector<8x16xf32>
    %cst_22 = arith.constant dense<0.000000e+00> : vector<8x512xf32>
    %30 = tpu.matmul %29, %0, %cst_22 {dimension_numbers = #tpu.dot_dimension_numbers<[1], [0], [0], [1], [0, 0, 1, 1], [], []>} : vector<8x16xf32>, vector<16x512xf32>, vector<8x512xf32> -> vector<8x512xf32>
    %31 = vector.broadcast %1 : vector<1x512xf32> to vector<8x512xf32>
    %32 = arith.addf %30, %31 : vector<8x512xf32>
    %c6 = arith.constant 6 : index
    %c0_23 = arith.constant 0 : index
    %c0_24 = arith.constant 0 : index
    %33 = vector.load %arg1[%c6, %c0_23, %c0_24] : memref<8x8x16xf32, #tpu.memory_space<vmem>>, vector<1x8x16xf32>
    %34 = vector.shape_cast %33 : vector<1x8x16xf32> to vector<8x16xf32>
    %cst_25 = arith.constant dense<0.000000e+00> : vector<8x512xf32>
    %35 = tpu.matmul %34, %0, %cst_25 {dimension_numbers = #tpu.dot_dimension_numbers<[1], [0], [0], [1], [0, 0, 1, 1], [], []>} : vector<8x16xf32>, vector<16x512xf32>, vector<8x512xf32> -> vector<8x512xf32>
    %36 = vector.broadcast %1 : vector<1x512xf32> to vector<8x512xf32>
    %37 = arith.addf %35, %36 : vector<8x512xf32>
    %c7 = arith.constant 7 : index
    %c0_26 = arith.constant 0 : index
    %c0_27 = arith.constant 0 : index
    %38 = vector.load %arg1[%c7, %c0_26, %c0_27] : memref<8x8x16xf32, #tpu.memory_space<vmem>>, vector<1x8x16xf32>
    %39 = vector.shape_cast %38 : vector<1x8x16xf32> to vector<8x16xf32>
    %cst_28 = arith.constant dense<0.000000e+00> : vector<8x512xf32>
    %40 = tpu.matmul %39, %0, %cst_28 {dimension_numbers = #tpu.dot_dimension_numbers<[1], [0], [0], [1], [0, 0, 1, 1], [], []>} : vector<8x16xf32>, vector<16x512xf32>, vector<8x512xf32> -> vector<8x512xf32>
    %41 = vector.broadcast %1 : vector<1x512xf32> to vector<8x512xf32>
    %42 = arith.addf %40, %41 : vector<8x512xf32>
    %cst_29 = arith.constant 0.000000e+00 : f32
    %43 = vector.broadcast %cst_29 : f32 to vector<8x128xf32>
    %cst_30 = arith.constant 0.000000e+00 : f32
    %44 = vector.broadcast %cst_30 : f32 to vector<8x128xf32>
    %cst_31 = arith.constant dense<0.000000e+00> : vector<8x512xf32>
    %45 = tpu.matmul %43, %2, %cst_31 {dimension_numbers = #tpu.dot_dimension_numbers<[1], [0], [0], [1], [0, 0, 1, 1], [], []>} : vector<8x128xf32>, vector<128x512xf32>, vector<8x512xf32> -> vector<8x512xf32>
    %46 = arith.addf %7, %45 : vector<8x512xf32>
    %47 = vector.extract_strided_slice %46 {offsets = [0, 0], sizes = [8, 384], strides = [1, 1]} : vector<8x512xf32> to vector<8x384xf32>
    %48 = arith.negf %47 : vector<8x384xf32>
    %49 = math.exp %48 : vector<8x384xf32>
    %cst_32 = arith.constant 1.000000e+00 : f32
    %50 = vector.broadcast %cst_32 : f32 to vector<8x384xf32>
    %51 = arith.addf %50, %49 : vector<8x384xf32>
    %52 = arith.divf %50, %51 : vector<8x384xf32>
    %53 = vector.extract_strided_slice %46 {offsets = [0, 384], sizes = [8, 128], strides = [1, 1]} : vector<8x512xf32> to vector<8x128xf32>
    %54 = math.tanh %53 : vector<8x128xf32>
    %55 = vector.extract_strided_slice %52 {offsets = [0, 0], sizes = [8, 128], strides = [1, 1]} : vector<8x384xf32> to vector<8x128xf32>
    %56 = vector.extract_strided_slice %52 {offsets = [0, 128], sizes = [8, 128], strides = [1, 1]} : vector<8x384xf32> to vector<8x128xf32>
    %57 = vector.extract_strided_slice %52 {offsets = [0, 256], sizes = [8, 128], strides = [1, 1]} : vector<8x384xf32> to vector<8x128xf32>
    %58 = arith.mulf %56, %44 : vector<8x128xf32>
    %59 = arith.mulf %55, %54 : vector<8x128xf32>
    %60 = arith.addf %58, %59 : vector<8x128xf32>
    %61 = math.tanh %60 : vector<8x128xf32>
    %62 = arith.mulf %57, %61 : vector<8x128xf32>
    %cst_33 = arith.constant dense<0.000000e+00> : vector<8x512xf32>
    %63 = tpu.matmul %62, %2, %cst_33 {dimension_numbers = #tpu.dot_dimension_numbers<[1], [0], [0], [1], [0, 0, 1, 1], [], []>} : vector<8x128xf32>, vector<128x512xf32>, vector<8x512xf32> -> vector<8x512xf32>
    %64 = arith.addf %12, %63 : vector<8x512xf32>
    %65 = vector.extract_strided_slice %64 {offsets = [0, 0], sizes = [8, 384], strides = [1, 1]} : vector<8x512xf32> to vector<8x384xf32>
    %66 = arith.negf %65 : vector<8x384xf32>
    %67 = math.exp %66 : vector<8x384xf32>
    %cst_34 = arith.constant 1.000000e+00 : f32
    %68 = vector.broadcast %cst_34 : f32 to vector<8x384xf32>
    %69 = arith.addf %68, %67 : vector<8x384xf32>
    %70 = arith.divf %68, %69 : vector<8x384xf32>
    %71 = vector.extract_strided_slice %64 {offsets = [0, 384], sizes = [8, 128], strides = [1, 1]} : vector<8x512xf32> to vector<8x128xf32>
    %72 = math.tanh %71 : vector<8x128xf32>
    %73 = vector.extract_strided_slice %70 {offsets = [0, 0], sizes = [8, 128], strides = [1, 1]} : vector<8x384xf32> to vector<8x128xf32>
    %74 = vector.extract_strided_slice %70 {offsets = [0, 128], sizes = [8, 128], strides = [1, 1]} : vector<8x384xf32> to vector<8x128xf32>
    %75 = vector.extract_strided_slice %70 {offsets = [0, 256], sizes = [8, 128], strides = [1, 1]} : vector<8x384xf32> to vector<8x128xf32>
    %76 = arith.mulf %74, %60 : vector<8x128xf32>
    %77 = arith.mulf %73, %72 : vector<8x128xf32>
    %78 = arith.addf %76, %77 : vector<8x128xf32>
    %79 = math.tanh %78 : vector<8x128xf32>
    %80 = arith.mulf %75, %79 : vector<8x128xf32>
    %cst_35 = arith.constant dense<0.000000e+00> : vector<8x512xf32>
    %81 = tpu.matmul %80, %2, %cst_35 {dimension_numbers = #tpu.dot_dimension_numbers<[1], [0], [0], [1], [0, 0, 1, 1], [], []>} : vector<8x128xf32>, vector<128x512xf32>, vector<8x512xf32> -> vector<8x512xf32>
    %82 = arith.addf %17, %81 : vector<8x512xf32>
    %83 = vector.extract_strided_slice %82 {offsets = [0, 0], sizes = [8, 384], strides = [1, 1]} : vector<8x512xf32> to vector<8x384xf32>
    %84 = arith.negf %83 : vector<8x384xf32>
    %85 = math.exp %84 : vector<8x384xf32>
    %cst_36 = arith.constant 1.000000e+00 : f32
    %86 = vector.broadcast %cst_36 : f32 to vector<8x384xf32>
    %87 = arith.addf %86, %85 : vector<8x384xf32>
    %88 = arith.divf %86, %87 : vector<8x384xf32>
    %89 = vector.extract_strided_slice %82 {offsets = [0, 384], sizes = [8, 128], strides = [1, 1]} : vector<8x512xf32> to vector<8x128xf32>
    %90 = math.tanh %89 : vector<8x128xf32>
    %91 = vector.extract_strided_slice %88 {offsets = [0, 0], sizes = [8, 128], strides = [1, 1]} : vector<8x384xf32> to vector<8x128xf32>
    %92 = vector.extract_strided_slice %88 {offsets = [0, 128], sizes = [8, 128], strides = [1, 1]} : vector<8x384xf32> to vector<8x128xf32>
    %93 = vector.extract_strided_slice %88 {offsets = [0, 256], sizes = [8, 128], strides = [1, 1]} : vector<8x384xf32> to vector<8x128xf32>
    %94 = arith.mulf %92, %78 : vector<8x128xf32>
    %95 = arith.mulf %91, %90 : vector<8x128xf32>
    %96 = arith.addf %94, %95 : vector<8x128xf32>
    %97 = math.tanh %96 : vector<8x128xf32>
    %98 = arith.mulf %93, %97 : vector<8x128xf32>
    %cst_37 = arith.constant dense<0.000000e+00> : vector<8x512xf32>
    %99 = tpu.matmul %98, %2, %cst_37 {dimension_numbers = #tpu.dot_dimension_numbers<[1], [0], [0], [1], [0, 0, 1, 1], [], []>} : vector<8x128xf32>, vector<128x512xf32>, vector<8x512xf32> -> vector<8x512xf32>
    %100 = arith.addf %22, %99 : vector<8x512xf32>
    %101 = vector.extract_strided_slice %100 {offsets = [0, 0], sizes = [8, 384], strides = [1, 1]} : vector<8x512xf32> to vector<8x384xf32>
    %102 = arith.negf %101 : vector<8x384xf32>
    %103 = math.exp %102 : vector<8x384xf32>
    %cst_38 = arith.constant 1.000000e+00 : f32
    %104 = vector.broadcast %cst_38 : f32 to vector<8x384xf32>
    %105 = arith.addf %104, %103 : vector<8x384xf32>
    %106 = arith.divf %104, %105 : vector<8x384xf32>
    %107 = vector.extract_strided_slice %100 {offsets = [0, 384], sizes = [8, 128], strides = [1, 1]} : vector<8x512xf32> to vector<8x128xf32>
    %108 = math.tanh %107 : vector<8x128xf32>
    %109 = vector.extract_strided_slice %106 {offsets = [0, 0], sizes = [8, 128], strides = [1, 1]} : vector<8x384xf32> to vector<8x128xf32>
    %110 = vector.extract_strided_slice %106 {offsets = [0, 128], sizes = [8, 128], strides = [1, 1]} : vector<8x384xf32> to vector<8x128xf32>
    %111 = vector.extract_strided_slice %106 {offsets = [0, 256], sizes = [8, 128], strides = [1, 1]} : vector<8x384xf32> to vector<8x128xf32>
    %112 = arith.mulf %110, %96 : vector<8x128xf32>
    %113 = arith.mulf %109, %108 : vector<8x128xf32>
    %114 = arith.addf %112, %113 : vector<8x128xf32>
    %115 = math.tanh %114 : vector<8x128xf32>
    %116 = arith.mulf %111, %115 : vector<8x128xf32>
    %cst_39 = arith.constant dense<0.000000e+00> : vector<8x512xf32>
    %117 = tpu.matmul %116, %2, %cst_39 {dimension_numbers = #tpu.dot_dimension_numbers<[1], [0], [0], [1], [0, 0, 1, 1], [], []>} : vector<8x128xf32>, vector<128x512xf32>, vector<8x512xf32> -> vector<8x512xf32>
    %118 = arith.addf %27, %117 : vector<8x512xf32>
    %119 = vector.extract_strided_slice %118 {offsets = [0, 0], sizes = [8, 384], strides = [1, 1]} : vector<8x512xf32> to vector<8x384xf32>
    %120 = arith.negf %119 : vector<8x384xf32>
    %121 = math.exp %120 : vector<8x384xf32>
    %cst_40 = arith.constant 1.000000e+00 : f32
    %122 = vector.broadcast %cst_40 : f32 to vector<8x384xf32>
    %123 = arith.addf %122, %121 : vector<8x384xf32>
    %124 = arith.divf %122, %123 : vector<8x384xf32>
    %125 = vector.extract_strided_slice %118 {offsets = [0, 384], sizes = [8, 128], strides = [1, 1]} : vector<8x512xf32> to vector<8x128xf32>
    %126 = math.tanh %125 : vector<8x128xf32>
    %127 = vector.extract_strided_slice %124 {offsets = [0, 0], sizes = [8, 128], strides = [1, 1]} : vector<8x384xf32> to vector<8x128xf32>
    %128 = vector.extract_strided_slice %124 {offsets = [0, 128], sizes = [8, 128], strides = [1, 1]} : vector<8x384xf32> to vector<8x128xf32>
    %129 = vector.extract_strided_slice %124 {offsets = [0, 256], sizes = [8, 128], strides = [1, 1]} : vector<8x384xf32> to vector<8x128xf32>
    %130 = arith.mulf %128, %114 : vector<8x128xf32>
    %131 = arith.mulf %127, %126 : vector<8x128xf32>
    %132 = arith.addf %130, %131 : vector<8x128xf32>
    %133 = math.tanh %132 : vector<8x128xf32>
    %134 = arith.mulf %129, %133 : vector<8x128xf32>
    %cst_41 = arith.constant dense<0.000000e+00> : vector<8x512xf32>
    %135 = tpu.matmul %134, %2, %cst_41 {dimension_numbers = #tpu.dot_dimension_numbers<[1], [0], [0], [1], [0, 0, 1, 1], [], []>} : vector<8x128xf32>, vector<128x512xf32>, vector<8x512xf32> -> vector<8x512xf32>
    %136 = arith.addf %32, %135 : vector<8x512xf32>
    %137 = vector.extract_strided_slice %136 {offsets = [0, 0], sizes = [8, 384], strides = [1, 1]} : vector<8x512xf32> to vector<8x384xf32>
    %138 = arith.negf %137 : vector<8x384xf32>
    %139 = math.exp %138 : vector<8x384xf32>
    %cst_42 = arith.constant 1.000000e+00 : f32
    %140 = vector.broadcast %cst_42 : f32 to vector<8x384xf32>
    %141 = arith.addf %140, %139 : vector<8x384xf32>
    %142 = arith.divf %140, %141 : vector<8x384xf32>
    %143 = vector.extract_strided_slice %136 {offsets = [0, 384], sizes = [8, 128], strides = [1, 1]} : vector<8x512xf32> to vector<8x128xf32>
    %144 = math.tanh %143 : vector<8x128xf32>
    %145 = vector.extract_strided_slice %142 {offsets = [0, 0], sizes = [8, 128], strides = [1, 1]} : vector<8x384xf32> to vector<8x128xf32>
    %146 = vector.extract_strided_slice %142 {offsets = [0, 128], sizes = [8, 128], strides = [1, 1]} : vector<8x384xf32> to vector<8x128xf32>
    %147 = vector.extract_strided_slice %142 {offsets = [0, 256], sizes = [8, 128], strides = [1, 1]} : vector<8x384xf32> to vector<8x128xf32>
    %148 = arith.mulf %146, %132 : vector<8x128xf32>
    %149 = arith.mulf %145, %144 : vector<8x128xf32>
    %150 = arith.addf %148, %149 : vector<8x128xf32>
    %151 = math.tanh %150 : vector<8x128xf32>
    %152 = arith.mulf %147, %151 : vector<8x128xf32>
    %cst_43 = arith.constant dense<0.000000e+00> : vector<8x512xf32>
    %153 = tpu.matmul %152, %2, %cst_43 {dimension_numbers = #tpu.dot_dimension_numbers<[1], [0], [0], [1], [0, 0, 1, 1], [], []>} : vector<8x128xf32>, vector<128x512xf32>, vector<8x512xf32> -> vector<8x512xf32>
    %154 = arith.addf %37, %153 : vector<8x512xf32>
    %155 = vector.extract_strided_slice %154 {offsets = [0, 0], sizes = [8, 384], strides = [1, 1]} : vector<8x512xf32> to vector<8x384xf32>
    %156 = arith.negf %155 : vector<8x384xf32>
    %157 = math.exp %156 : vector<8x384xf32>
    %cst_44 = arith.constant 1.000000e+00 : f32
    %158 = vector.broadcast %cst_44 : f32 to vector<8x384xf32>
    %159 = arith.addf %158, %157 : vector<8x384xf32>
    %160 = arith.divf %158, %159 : vector<8x384xf32>
    %161 = vector.extract_strided_slice %154 {offsets = [0, 384], sizes = [8, 128], strides = [1, 1]} : vector<8x512xf32> to vector<8x128xf32>
    %162 = math.tanh %161 : vector<8x128xf32>
    %163 = vector.extract_strided_slice %160 {offsets = [0, 0], sizes = [8, 128], strides = [1, 1]} : vector<8x384xf32> to vector<8x128xf32>
    %164 = vector.extract_strided_slice %160 {offsets = [0, 128], sizes = [8, 128], strides = [1, 1]} : vector<8x384xf32> to vector<8x128xf32>
    %165 = vector.extract_strided_slice %160 {offsets = [0, 256], sizes = [8, 128], strides = [1, 1]} : vector<8x384xf32> to vector<8x128xf32>
    %166 = arith.mulf %164, %150 : vector<8x128xf32>
    %167 = arith.mulf %163, %162 : vector<8x128xf32>
    %168 = arith.addf %166, %167 : vector<8x128xf32>
    %169 = math.tanh %168 : vector<8x128xf32>
    %170 = arith.mulf %165, %169 : vector<8x128xf32>
    %cst_45 = arith.constant dense<0.000000e+00> : vector<8x512xf32>
    %171 = tpu.matmul %170, %2, %cst_45 {dimension_numbers = #tpu.dot_dimension_numbers<[1], [0], [0], [1], [0, 0, 1, 1], [], []>} : vector<8x128xf32>, vector<128x512xf32>, vector<8x512xf32> -> vector<8x512xf32>
    %172 = arith.addf %42, %171 : vector<8x512xf32>
    %173 = vector.extract_strided_slice %172 {offsets = [0, 0], sizes = [8, 384], strides = [1, 1]} : vector<8x512xf32> to vector<8x384xf32>
    %174 = arith.negf %173 : vector<8x384xf32>
    %175 = math.exp %174 : vector<8x384xf32>
    %cst_46 = arith.constant 1.000000e+00 : f32
    %176 = vector.broadcast %cst_46 : f32 to vector<8x384xf32>
    %177 = arith.addf %176, %175 : vector<8x384xf32>
    %178 = arith.divf %176, %177 : vector<8x384xf32>
    %179 = vector.extract_strided_slice %172 {offsets = [0, 384], sizes = [8, 128], strides = [1, 1]} : vector<8x512xf32> to vector<8x128xf32>
    %180 = math.tanh %179 : vector<8x128xf32>
    %181 = vector.extract_strided_slice %178 {offsets = [0, 0], sizes = [8, 128], strides = [1, 1]} : vector<8x384xf32> to vector<8x128xf32>
    %182 = vector.extract_strided_slice %178 {offsets = [0, 128], sizes = [8, 128], strides = [1, 1]} : vector<8x384xf32> to vector<8x128xf32>
    %183 = vector.extract_strided_slice %178 {offsets = [0, 256], sizes = [8, 128], strides = [1, 1]} : vector<8x384xf32> to vector<8x128xf32>
    %184 = arith.mulf %182, %168 : vector<8x128xf32>
    %185 = arith.mulf %181, %180 : vector<8x128xf32>
    %186 = arith.addf %184, %185 : vector<8x128xf32>
    %187 = math.tanh %186 : vector<8x128xf32>
    %188 = arith.mulf %183, %187 : vector<8x128xf32>
    %cst_47 = arith.constant 0.000000e+00 : f32
    %189 = vector.broadcast %cst_47 : f32 to vector<8x128xf32>
    %190 = arith.maximumf %188, %189 : vector<8x128xf32>
    %c0_48 = arith.constant 0 : index
    %c0_49 = arith.constant 0 : index
    %191 = vector.load %arg5[%c0_48, %c0_49] : memref<128x1xf32, #tpu.memory_space<vmem>>, vector<128x1xf32>
    %cst_50 = arith.constant dense<0.000000e+00> : vector<8x1xf32>
    %192 = tpu.matmul %190, %191, %cst_50 {dimension_numbers = #tpu.dot_dimension_numbers<[1], [0], [0], [1], [0, 0, 1, 1], [], []>} : vector<8x128xf32>, vector<128x1xf32>, vector<8x1xf32> -> vector<8x1xf32>
    %c0_51 = arith.constant 0 : index
    %c0_52 = arith.constant 0 : index
    %193 = vector.load %arg6[%c0_51, %c0_52] : memref<1x1xf32, #tpu.memory_space<vmem>>, vector<1x1xf32>
    %194 = vector.broadcast %193 : vector<1x1xf32> to vector<8x1xf32>
    %195 = arith.addf %192, %194 : vector<8x1xf32>
    %c0_53 = arith.constant 0 : index
    %c0_54 = arith.constant 0 : index
    %196 = vector.load %arg7[%c0_53, %c0_54] : memref<8x1xf32, #tpu.memory_space<vmem>>, vector<8x1xf32>
    tpu.vector_store %arg7[%c0_53, %c0_54], %195 {strides = array<i32>} : memref<8x1xf32, #tpu.memory_space<vmem>>, vector<8x1xf32>,
    return
  }
  func.func @transform_0(%arg0: i32) -> (i32, i32, i32) {
    %c0_i32 = arith.constant 0 : i32
    %c0_i32_0 = arith.constant 0 : i32
    %c0_i32_1 = arith.constant 0 : i32
    return %c0_i32, %arg0, %c0_i32_0 : i32, i32, i32
  }
  func.func @transform_1(%arg0: i32) -> (i32, i32) {
    %c0_i32 = arith.constant 0 : i32
    %c0_i32_0 = arith.constant 0 : i32
    %c0_i32_1 = arith.constant 0 : i32
    return %c0_i32, %c0_i32_0 : i32, i32
  }
  func.func @transform_2(%arg0: i32) -> (i32, i32) {
    %c0_i32 = arith.constant 0 : i32
    %c0_i32_0 = arith.constant 0 : i32
    %c0_i32_1 = arith.constant 0 : i32
    return %c0_i32, %c0_i32_0 : i32, i32
  }
  func.func @transform_3(%arg0: i32) -> (i32, i32) {
    %c0_i32 = arith.constant 0 : i32
    %c0_i32_0 = arith.constant 0 : i32
    %c0_i32_1 = arith.constant 0 : i32
    return %c0_i32, %c0_i32_0 : i32, i32
  }
  func.func @transform_4(%arg0: i32) -> (i32, i32) {
    %c0_i32 = arith.constant 0 : i32
    %c0_i32_0 = arith.constant 0 : i32
    %c0_i32_1 = arith.constant 0 : i32
    return %c0_i32, %c0_i32_0 : i32, i32
  }
  func.func @transform_5(%arg0: i32) -> (i32, i32) {
    %c0_i32 = arith.constant 0 : i32
    %c0_i32_0 = arith.constant 0 : i32
    %c0_i32_1 = arith.constant 0 : i32
    return %c0_i32, %c0_i32_0 : i32, i32
  }
  func.func @transform_6(%arg0: i32) -> (i32, i32) {
    %c0_i32 = arith.constant 0 : i32
    %c0_i32_0 = arith.constant 0 : i32
    return %arg0, %c0_i32 : i32, i32
  }
}

</mosaic_0001>

<bundles_post_ra>
// kernel: tpu_custom_call.1
= control target key start
LH: loop header
LB: loop body
LE: loop exit
PB: predicated region body
PF: predicated region fallthrough
CT: control target
= control target key end

     0   :  { %s4947_s0 = inlined_call_operand.vmem [shape: f32[8,16,16], index: 0, kind: input, shape index: {}]   ;;  %s4948_s1 = inlined_call_operand.hbm [shape: f32[16,512], index: 1, kind: input, shape index: {}]   ;;  %s4949_s2 = inlined_call_operand.hbm [shape: f32[128,512], index: 2, kind: input, shape index: {}]   ;;  %s4950_s3 = inlined_call_operand.vmem [shape: f32[1,512], index: 3, kind: input, shape index: {}]   ;;  %s4951_s4 = inlined_call_operand.vmem [shape: f32[128,1], index: 4, kind: input, shape index: {}]   ;;  %s4952_s5 = inlined_call_operand.<no memory space> [shape: f32[1,1], index: 5, kind: input, shape index: {}]   ;;  %s4953_s6 = inlined_call_operand.vmem [shape: f32[16,1], index: 6, kind: output, shape index: {}]  }
   0x1   :  { %v11_v0 = vstv %s4952_s5 }
   0x2   :  { %12 = vst [vmem:[#allocation2] sm:$0x1] %v11_v0 }
   0x3   :  { %13 = vsyncpa [#allocation5], 0 }
   0x4   :  { %14 = vsyncpa [#allocation7], 0  ;;  %s4241_s23 = smov 0   ;;  %s4243_s24 = smov 0  }
   0x5   :  { %s4245_s25 = smov 0  }
   0x6 LB: > { %s4257_s5 = sadd.s32 4294967295, %s4194_s25   ;;  %s4260_s26 = sadd.s32 1, %s4194_s25   ;;  %s4194_s25 = sphi %s4245_s25, %s4967_s25   ;;  %s4190_s24 = sphi %s4243_s24, %s4966_s24   ;;  %s4186_s23 = sphi %s4241_s23, %s4965_s23  }
   0x7   : > { %s24_s27 = ssub.s32 %s4194_s25, %s4260_s26  ;;  %s27_s28 = sadd.s32 1, %s4190_s24 }
   0x8   : > { %p25_p0 = scmp.eq.s32.totalorder %s24_s27, 0  ;;  %p34_p1 = scmp.ne.s32.totalorder %s4190_s24, %s4186_s23 }
   0x9   : > { %p35_p2 = scmp.eq.s32.totalorder %s4194_s25, 0  ;;  %p3153_p3 = scmp.ge.s32.totalorder %s4194_s25, 1 }
   0xa   : > { %s4270_s29 = scalar_select %p25_p0, %s4190_s24, %s27_s28  }
   0xb   : > { %p4272_p4 = por %p35_p2, %p34_p1  ;;  %p182_p5 = scmp.lt.s32.totalorder %s4194_s25, 3 }
   0xc   : > { %p4954_p6 = scmp.eq.s32.totalorder %s4257_s5, 0  ;;  %s4196_s8 = smov [#allocation4]  }
   0xd   : > { %s4956_s30 = scalar_select %p4272_p4, 1, 0 }
   0xe   : > { %p4278_p7 = pnand %p3153_p3, %p182_p5  ;;  %s194_s9 = sshll.u32 %s4196_s8, 4  ;;  %s195_s9 = int_to_ptr.vmem [resolvable:$true] %s194_s9 }
   0xf   : > { %s4197_s11 = smov [#allocation6]   ;;  %s4108_s15 = scalar_lea.hbm %s4948_s1, 1024 }
  0x10   : > { %s4957_s7 = scalar_select %p4278_p7, 1, 0 }
  0x11   : > { %p3938_p8 = pneg %p4278_p7  ;;  %s207_s12 = sshll.u32 %s4197_s11, 4  ;;  %s4290_s12 = int_to_ptr.vmem [resolvable:$true] %s207_s12 }
  0x12   : > { %p4109_p10 = scmp.ne.s32.totalorder %s4948_s1, %s4108_s15  ;;  %p4115_p0 = scmp.lt.u32.totalorder %s4108_s15, %s4948_s1 }
  0x13   : > { %p4286_p9 = pnand %p4954_p6, %p3938_p8 }
  0x15   : > { %p4110_p11 = pneg %p4286_p9 }
  0x17   : > { %p4111_p12 = pnand %p4110_p11, %p4109_p10 }
  0x19   : > { %p4112_p13 = pneg %p4111_p12 }
  0x1b   : > { %p4117_p1 = pnand %p4115_p0, %p4112_p13 }
  0x1d   : > { %4120 = shalt.err (!%p4117_p1)
}
  0x1e   : > { %s4121_s20 = scalar_lea.vmem %s195_s9, 1024  ;;  %p4129_p8 = scmp.lt.s32.totalorder %s195_s9, %s195_s9 }
  0x1f   : > { %p4122_p2 = scmp.ne.s32.totalorder %s195_s9, %s4121_s20  ;;  %p4130_p6 = scmp.lt.s32.totalorder %s4121_s20, %s4121_s20 }
  0x21   : > { %p4124_p3 = pnand %p4122_p2, %p4110_p11  ;;  %p4131_p7 = por %p4130_p6, %p4129_p8 }
  0x23   : > { %p4125_p5 = pneg %p4124_p3 }
  0x25   : > { %p4132_p4 = pnand %p4131_p7, %p4125_p5 }
  0x27   : > { %4135 = shalt.err (!%p4132_p4)
}
  0x28   : > { %s4198_s21 = smov 512   ;;  %s4199_s22 = smov 32  }
  0x29   : > { %3941 = dma.hbm_to_vmem [thread:$0]  (!%p4286_p9), %s4948_s1, 1024, %s195_s9, [#allocation5], %s4198_s21, %s4198_s21, %s4199_s22  }
  0x2a   : > { %s4136_s13 = scalar_lea.hbm %s4949_s2, 8192 }
  0x2b   : > { %p4137_p10 = scmp.ne.s32.totalorder %s4949_s2, %s4136_s13  ;;  %p4143_p7 = scmp.lt.u32.totalorder %s4136_s13, %s4949_s2 }
  0x2d   : > { %p4139_p4 = pnand %p4137_p10, %p4110_p11 }
  0x2f   : > { %p4140_p6 = pneg %p4139_p4 }
  0x31   : > { %p4145_p12 = pnand %p4143_p7, %p4140_p6 }
  0x33   : > { %4148 = shalt.err (!%p4145_p12)
}
  0x34   : > { %s4149_s9 = scalar_lea.vmem %s4290_s12, 8192  ;;  %p4157_p2 = scmp.lt.s32.totalorder %s4290_s12, %s4290_s12 }
  0x35   : > { %p4150_p13 = scmp.ne.s32.totalorder %s4290_s12, %s4149_s9  ;;  %p4158_p3 = scmp.lt.s32.totalorder %s4149_s9, %s4149_s9 }
  0x37   : > { %p4152_p0 = pnand %p4150_p13, %p4110_p11  ;;  %p4159_p5 = por %p4158_p3, %p4157_p2 }
  0x39   : > { %p4153_p1 = pneg %p4152_p0 }
  0x3b   : > { %p4160_p8 = pnand %p4159_p5, %p4153_p1 }
  0x3d   : > { %4163 = shalt.err (!%p4160_p8)
}
  0x3e   : > { %3944 = dma.hbm_to_vmem [thread:$0]  (!%p4286_p9), %s4949_s2, 8192, %s4290_s12, [#allocation7], %s4198_s21, %s4198_s21, %s4199_s22  }
  0x3f   : > { %p3156_p10 = scmp.ge.s32.totalorder %s4194_s25, 2 }
  0x40   : > { %p4959_p4 = scmp.ne.s32.totalorder (!%p3156_p10), %s4956_s30, 0 }
  0x41   : > { %226 = sbr.rel (%p3156_p10) target bundleno = 80 (0x50), region = 36 }
  0x48   : > { %229 = sbr.rel (!%p4959_p4) target bundleno = 80 (0x50), region = 40  ;;  %s231_s20 = sand.u32 (%p4959_p4), 1, %s4190_s24  }
  0x49   : > { %s3158_s27 = sshll.u32 (%p4959_p4), %s4194_s25, 3  ;;  %s3157_s28 = sshll.u32 (%p4959_p4), %s231_s20, 6 }
  0x4a   : > { %s235_s10 = scalar_lea.vmem (%p4959_p4), %s4947_s0, %s3158_s27  ;;  %s233_s13 = scalar_lea.vmem (%p4959_p4), [#allocation3], %s3157_s28 }
  0x4b   : > { %v277_v1 = vld [vmem:[%s235_s10] sm:$0xff] (%p4959_p4)  ;;  %v279_v2 = vld [vmem:[%s235_s10 + $0x10] sm:$0xff] (%p4959_p4) }
  0x4c   : > { %v281_v3 = vld [vmem:[%s235_s10 + $0x20] sm:$0xff] (%p4959_p4)  ;;  %278 = vst [vmem:[%s233_s13] sm:$0xff] (%p4959_p4), %v277_v1  ;;  %280 = vst [vmem:[%s233_s13 + $0x8] sm:$0xff] (%p4959_p4), %v279_v2  ;;  %v283_v4 = vld [vmem:[%s235_s10 + $0x30] sm:$0xff] (%p4959_p4) }
  0x4d   : > { %282 = vst [vmem:[%s233_s13 + $0x10] sm:$0xff] (%p4959_p4), %v281_v3  ;;  %v285_v5 = vld [vmem:[%s235_s10 + $0x40] sm:$0xff] (%p4959_p4)  ;;  %v287_v6 = vld [vmem:[%s235_s10 + $0x50] sm:$0xff] (%p4959_p4)  ;;  %284 = vst [vmem:[%s233_s13 + $0x18] sm:$0xff] (%p4959_p4), %v283_v4 }
  0x4e   : > { %286 = vst [vmem:[%s233_s13 + $0x20] sm:$0xff] (%p4959_p4), %v285_v5  ;;  %288 = vst [vmem:[%s233_s13 + $0x28] sm:$0xff] (%p4959_p4), %v287_v6  ;;  %v289_v7 = vld [vmem:[%s235_s10 + $0x60] sm:$0xff] (%p4959_p4)  ;;  %v291_v8 = vld [vmem:[%s235_s10 + $0x70] sm:$0xff] (%p4959_p4) }
  0x4f   : > { %290 = vst [vmem:[%s233_s13 + $0x30] sm:$0xff] %v289_v7  ;;  %292 = vst [vmem:[%s233_s13 + $0x38] sm:$0xff] %v291_v8 }
  0x50 PF: > { %p4960_p9 = scmp.ne.s32.totalorder %s4957_s7, 0 }
  0x51   : > { %s304_s25 = sand.u32 (!%p4960_p9), 1, %s4186_s23   ;;  %p4961_p11 = scmp.eq.s32.totalorder (!%p4960_p9), %s4257_s5, 0 }
  0x52   : > { %301 = sbr.rel (%p4960_p9) target bundleno = 2444 (0x98c), region = 78  ;;  %s3160_s30 = sshll.u32 (!%p4960_p9), %s304_s25, 6 }
  0x53   : > { %s4350_s12 = scalar_lea.vmem (!%p4960_p9), [#allocation3], %s3160_s30 }
  0x59   : > { %4177 = dma.done.wait (%p4961_p11), [#allocation5], 1024   ;;  %p4962_p6 = pmov %p4961_p11 }
  0x5b   : > { %4179 = vsyncadd (%p4962_p6), [#allocation5], 4294966272  ;;  %p4963_p7 = pmov %p4962_p6 }
  0x5c   : > { %p4964_p12 = pmov %p4962_p6 }
  0x5d   : > { %4181 = dma.done.wait (%p4963_p7), [#allocation7], 8192  }
  0x5e   : > { %4183 = vsyncadd (%p4964_p12), [#allocation7], 4294959104  ;;  %v4200_v9 = vmov 0.0   ;;  %v345_v10 = vld [vmem:[#allocation4 + $0x8] sm:$0xff]  ;;  %v344_v12 = vld [vmem:[#allocation4] sm:$0xff]  ;;  %vm439_vm0 = vcmask 130048  }
  0x5f   : > { %507 = vmatprep.mubr.f32.mxu1 %v4200_v9  ;;  %1095 = vmatprep.mubr.f32.mxu0 %v4200_v9  ;;  %v349_v11 = vld [vmem:[#allocation4 + $0x28] sm:$0xff]  ;;  %v348_v14 = vld [vmem:[#allocation4 + $0x20] sm:$0xff]  ;;  %v347_v15 = vld [vmem:[#allocation4 + $0x18] sm:$0xff]  ;;  %vm4202_vm1 = vmmov 0   ;;  %p340_p13 = scmp.lt.s32.totalorder %s4257_s5, 1  ;;  %vm3068_vm2 = vcmask 7168  }
  0x60   : > { %v4362_v13 = vpack.c.bf16 %v349_v11, %v345_v10  ;;  %v4364_v16 = vpack.c.bf16 %v348_v14, %v344_v12  ;;  %v351_v17 = vld [vmem:[#allocation4 + $0x38] sm:$0xff]  ;;  %v346_v18 = vld [vmem:[#allocation4 + $0x10] sm:$0xff]  ;;  %v417_v21 = vld [vmem:[%s4350_s12] sm:$0xff] }
  0x61   : > { %v350_v19 = vld [vmem:[#allocation4 + $0x30] sm:$0xff]  ;;  %v4368_v20 = vpack.c.bf16 %v351_v17, %v347_v15  ;;  %v4376_v23 = vld [vmem:[%s4350_s12 + $0x20] sm:$0xff]  ;;  %v4386_v24 = vld [vmem:[%s4350_s12 + $0x28] sm:$0xff]  ;;  %s4969_s5 = smov (!%p340_p13, %s4257_s5), 1 }
  0x62   : > { %3267 = vmatprep.subr.bf16.mxu1 %v4362_v13  ;;  %3299 = vmatprep.subr.bf16.mxu0 %v4362_v13  ;;  %v4373_v22 = vpack.c.bf16 %v350_v19, %v346_v18  ;;  %v354_v25 = vld [vmem:[#allocation6 + $0x8] sm:$0xff]  ;;  %v4399_v28 = vld [vmem:[%s4350_s12 + $0x30] sm:$0xff]  ;;  %v353_v29 = vld [vmem:[#allocation6] sm:$0xff]  ;;  %s3163_s28 = sshll.u32 %s4969_s5, 3 }
  0x63   : > { %3269 = vmatpush1.bf16.msra.mxu1 %v4364_v16  ;;  %3301 = vmatpush1.bf16.msra.mxu0 %v4364_v16  ;;  %v358_v26 = vld [vmem:[#allocation6 + $0x28] sm:$0xff]  ;;  %v357_v30 = vld [vmem:[#allocation6 + $0x20] sm:$0xff]  ;;  %v4413_v34 = vld [vmem:[%s4350_s12 + $0x38] sm:$0xff]  ;;  %s343_s10 = scalar_lea.vmem %s4953_s6, %s3163_s28 }
  0x64   : > { %3271 = vmatprep.subr.bf16.mxu1 %v4368_v20  ;;  %3307 = vmatprep.subr.bf16.mxu0 %v4362_v13  ;;  %v3166_v27 = vld [vmem:[%s4350_s12 + $0x8] sm:$0xff]  ;;  %v4405_v31 = vpack.c.bf16 %v358_v26, %v354_v25  ;;  %v4415_v35 = vpack.c.bf16 %v357_v30, %v353_v29  ;;  %v361_v36 = vld [vmem:[#allocation6 + $0x40] sm:$0xff]  ;;  %v3169_v41 = vld [vmem:[%s4350_s12 + $0x10] sm:$0xff] }
  0x65   : > { %v362_v32 = vld [vmem:[#allocation6 + $0x48] sm:$0xff]  ;;  %v365_v37 = vld [vmem:[#allocation6 + $0x60] sm:$0xff]  ;;  %v3172_v54 = vld [vmem:[%s4350_s12 + $0x18] sm:$0xff] }
  0x66   : > { %3164 = vmatmul.mubr.msk.f32.vlgmr.msra.gmra.mrb[0].mxu1 %vm439_vm0, %v417_v21  ;;  %3176 = vmatmul.mubr.msk.f32.vlgmr.msra.gmra.mrb[0].mxu0 %vm439_vm0, %v4376_v23  ;;  %v366_v33 = vld [vmem:[#allocation6 + $0x68] sm:$0xff]  ;;  %v4429_v42 = vpack.c.bf16 %v365_v37, %v361_v36  ;;  %v369_v43 = vld [vmem:[#allocation6 + $0x80] sm:$0xff]  ;;  %v356_v14 = vld [vmem:[#allocation6 + $0x18] sm:$0xff] }
  0x67   : > { %3273 = vmatpush1.bf16.msra.mxu1 %v4373_v22  ;;  %3309 = vmatpush1.bf16.msra.mxu0 %v4364_v16  ;;  %v4421_v38 = vpack.c.bf16 %v366_v33, %v362_v32  ;;  %v370_v39 = vld [vmem:[#allocation6 + $0x88] sm:$0xff]  ;;  %v373_v44 = vld [vmem:[#allocation6 + $0xa0] sm:$0xff]  ;;  %v360_v15 = vld [vmem:[#allocation6 + $0x38] sm:$0xff] }
  0x68   : > { %578 = vmatprep.mubr.f32.mxu1 %v4200_v9  ;;  %3275 = vmatprep.subr.bf16.mxu1 %v4362_v13  ;;  %v374_v40 = vld [vmem:[#allocation6 + $0xa8] sm:$0xff]  ;;  %v4440_v48 = vpack.c.bf16 %v373_v44, %v369_v43  ;;  %v377_v49 = vld [vmem:[#allocation6 + $0xc0] sm:$0xff]  ;;  %v4497_v17 = vpack.c.bf16 %v360_v15, %v356_v14  ;;  %v355_v18 = vld [vmem:[#allocation6 + $0x10] sm:$0xff] }
  0x69   : > { %1242 = vmatprep.mubr.f32.mxu0 %v4200_v9  ;;  %3315 = vmatprep.subr.bf16.mxu0 %v4362_v13  ;;  %v4434_v45 = vpack.c.bf16 %v374_v40, %v370_v39  ;;  %v378_v46 = vld [vmem:[#allocation6 + $0xc8] sm:$0xff]  ;;  %v381_v50 = vld [vmem:[#allocation6 + $0xe0] sm:$0xff]  ;;  %v359_v19 = vld [vmem:[#allocation6 + $0x30] sm:$0xff] }
  0x6a   : > { %3165 = vmatmul.mubr.msk.f32.vlgmr.msra.gmra.mrb[2].mxu1 %vm439_vm0, %v417_v21  ;;  %3179 = vmatmul.mubr.msk.f32.vlgmr.msra.gmra.mrb[2].mxu0 %vm439_vm0, %v4386_v24  ;;  %v382_v47 = vld [vmem:[#allocation6 + $0xe8] sm:$0xff]  ;;  %v4451_v55 = vpack.c.bf16 %v381_v50, %v377_v49  ;;  %v385_v56 = vld [vmem:[#allocation6 + $0x100] sm:$0xff]  ;;  %v364_v21 = vld [vmem:[#allocation6 + $0x58] sm:$0xff] }
  0x6b   : > { %3277 = vmatpush1.bf16.msra.mxu1 %v4364_v16  ;;  %3317 = vmatpush1.bf16.msra.mxu0 %v4364_v16  ;;  %v4445_v51 = vpack.c.bf16 %v382_v47, %v378_v46  ;;  %v386_v52 = vld [vmem:[#allocation6 + $0x108] sm:$0xff]  ;;  %v389_v57 = vld [vmem:[#allocation6 + $0x120] sm:$0xff]  ;;  %v363_v25 = vld [vmem:[#allocation6 + $0x50] sm:$0xff] }
  0x6c   : > { %654 = vmatprep.mubr.f32.mxu1 %v4200_v9  ;;  %3279 = vmatprep.subr.bf16.mxu1 %v4368_v20  ;;  %v390_v53 = vld [vmem:[#allocation6 + $0x128] sm:$0xff]  ;;  %v4461_v61 = vpack.c.bf16 %v389_v57, %v385_v56  ;;  %v393_v62 = vld [vmem:[#allocation6 + $0x140] sm:$0xff]  ;;  %v367_v26 = vld [vmem:[#allocation6 + $0x70] sm:$0xff] }
  0x6d   : > { %1389 = vmatprep.mubr.f32.mxu0 %v4200_v9  ;;  %3323 = vmatprep.subr.bf16.mxu0 %v4362_v13  ;;  %v4456_v58 = vpack.c.bf16 %v390_v53, %v386_v52  ;;  %v394_v59 = vld [vmem:[#allocation6 + $0x148] sm:$0xff]  ;;  %v397_v63 = vld [vmem:[#allocation6 + $0x160] sm:$0xff]  ;;  %v376_v29 = vld [vmem:[#allocation6 + $0xb8] sm:$0xff] }
  0x6e   : > { %3167 = vmatmul.mubr.msk.f32.vlgmr.msra.gmra.mrb[4].mxu1 %vm439_vm0, %v3166_v27  ;;  %3182 = vmatmul.mubr.msk.f32.vlgmr.msra.gmra.mrb[4].mxu0 %vm439_vm0, %v4399_v28  ;;  %v398_v60 = vld [vmem:[#allocation6 + $0x168] sm:$0xff]  ;;  %v4471_v3 = vpack.c.bf16 %v397_v63, %v393_v62  ;;  %v401_v4 = vld [vmem:[#allocation6 + $0x180] sm:$0xff]  ;;  %v371_v30 = vld [vmem:[#allocation6 + $0x90] sm:$0xff] }
  0x6f   : > { %3281 = vmatpush1.bf16.msra.mxu1 %v4373_v22  ;;  %3325 = vmatpush1.bf16.msra.mxu0 %v4364_v16  ;;  %v4466_v0 = vpack.c.bf16 %v398_v60, %v394_v59  ;;  %v402_v1 = vld [vmem:[#allocation6 + $0x188] sm:$0xff]  ;;  %v405_v5 = vld [vmem:[#allocation6 + $0x1a0] sm:$0xff]  ;;  %v375_v32 = vld [vmem:[#allocation6 + $0xb0] sm:$0xff] }
  0x70   : > { %725 = vmatprep.mubr.f32.mxu1 %v4200_v9  ;;  %3283 = vmatprep.subr.bf16.mxu1 %v4362_v13  ;;  %v406_v2 = vld [vmem:[#allocation6 + $0x1a8] sm:$0xff]  ;;  %v4482_v10 = vpack.c.bf16 %v405_v5, %v401_v4  ;;  %v409_v11 = vld [vmem:[#allocation6 + $0x1c0] sm:$0xff]  ;;  %v380_v33 = vld [vmem:[#allocation6 + $0xd8] sm:$0xff] }
  0x71   : > { %1536 = vmatprep.mubr.f32.mxu0 %v4200_v9  ;;  %3331 = vmatprep.subr.bf16.mxu0 %v4405_v31  ;;  %v4476_v6 = vpack.c.bf16 %v406_v2, %v402_v1  ;;  %v410_v7 = vld [vmem:[#allocation6 + $0x1c8] sm:$0xff]  ;;  %v413_v12 = vld [vmem:[#allocation6 + $0x1e0] sm:$0xff]  ;;  %v384_v36 = vld [vmem:[#allocation6 + $0xf8] sm:$0xff] }
  0x72   : > { %3168 = vmatmul.mubr.msk.f32.vlgmr.msra.gmra.mrb[6].mxu1 %vm439_vm0, %v3166_v27  ;;  %3185 = vmatmul.mubr.msk.f32.vlgmr.msra.gmra.mrb[6].mxu0 %vm439_vm0, %v4413_v34  ;;  %v414_v8 = vld [vmem:[#allocation6 + $0x1e8] sm:$0xff]  ;;  %v372_v27 = vld [vmem:[#allocation6 + $0x98] sm:$0xff]  ;;  %v4528_v37 = vpack.c.bf16 %v384_v36, %v380_v33  ;;  %v379_v39 = vld [vmem:[#allocation6 + $0xd0] sm:$0xff] }
  0x73   : > { %3285 = vmatpush1.bf16.msra.mxu1 %v4364_v16  ;;  %3333 = vmatpush1.bf16.msra.mxu0 %v4415_v35  ;;  %v383_v40 = vld [vmem:[#allocation6 + $0xf0] sm:$0xff]  ;;  %v392_v43 = vld [vmem:[#allocation6 + $0x138] sm:$0xff] }
  0x74   : > { %801 = vmatprep.mubr.f32.mxu1 %v4200_v9  ;;  %3287 = vmatprep.subr.bf16.mxu1 %v4368_v20  ;;  %v4533_v44 = vpack.c.bf16 %v383_v40, %v379_v39  ;;  %v387_v47 = vld [vmem:[#allocation6 + $0x110] sm:$0xff]  ;;  %v396_v50 = vld [vmem:[#allocation6 + $0x158] sm:$0xff] }
  0x75   : > { %3335 = vmatprep.subr.bf16.mxu0 %v4421_v38  ;;  %1678 = vmatprep.mubr.f32.mxu0 %v4200_v9  ;;  %v391_v49 = vld [vmem:[#allocation6 + $0x130] sm:$0xff]  ;;  %v400_v52 = vld [vmem:[#allocation6 + $0x178] sm:$0xff] }
  0x76   : > { %3170 = vmatmul.mubr.msk.f32.vlgmr.msra.gmra.mrb[8].mxu1 %vm439_vm0, %v3169_v41  ;;  %v4541_v53 = vpack.c.bf16 %v391_v49, %v387_v47  ;;  %v395_v56 = vld [vmem:[#allocation6 + $0x150] sm:$0xff]  ;;  %v404_v59 = vld [vmem:[#allocation6 + $0x198] sm:$0xff] }
  0x77   : > { %3289 = vmatpush1.bf16.msra.mxu1 %v4373_v22  ;;  %3337 = vmatpush1.bf16.msra.mxu0 %v4429_v42  ;;  %v399_v57 = vld [vmem:[#allocation6 + $0x170] sm:$0xff]  ;;  %v408_v60 = vld [vmem:[#allocation6 + $0x1b8] sm:$0xff] }
  0x78   : > { %872 = vmatprep.mubr.f32.mxu1 %v4200_v9  ;;  %3291 = vmatprep.subr.bf16.mxu1 %v4362_v13  ;;  %v4487_v13 = vpack.c.bf16 %v414_v8, %v410_v7  ;;  %v4549_v62 = vpack.c.bf16 %v399_v57, %v395_v56  ;;  %v4552_v63 = vpack.c.bf16 %v408_v60, %v404_v59  ;;  %v403_v1 = vld [vmem:[#allocation6 + $0x190] sm:$0xff]  ;;  %v412_v4 = vld [vmem:[#allocation6 + $0x1d8] sm:$0xff] }
  0x79   : > { %3339 = vmatprep.subr.bf16.mxu0 %v4434_v45  ;;  %v407_v2 = vld [vmem:[#allocation6 + $0x1b0] sm:$0xff]  ;;  %v416_v5 = vld [vmem:[#allocation6 + $0x1f8] sm:$0xff] }
  0x7a   : > { %3171 = vmatmul.mubr.msk.f32.vlgmr.msra.gmra.mrb[10].mxu1 %vm439_vm0, %v3169_v41  ;;  %v388_v41 = vld [vmem:[#allocation6 + $0x118] sm:$0xff]  ;;  %v4557_v7 = vpack.c.bf16 %v407_v2, %v403_v1  ;;  %v4560_v8 = vpack.c.bf16 %v416_v5, %v412_v4 }
  0x7b   : > { %3293 = vmatpush1.bf16.msra.mxu1 %v4364_v16  ;;  %3341 = vmatpush1.bf16.msra.mxu0 %v4440_v48  ;;  %v4493_v16 = vpack.c.bf16 %v413_v12, %v409_v11  ;;  %v4536_v46 = vpack.c.bf16 %v392_v43, %v388_v41  ;;  %v411_v11 = vld [vmem:[#allocation6 + $0x1d0] sm:$0xff]  ;;  %v352_v33 = vld [vmem:[%s4950_s3] sm:$0xf] }
  0x7c   : > { %948 = vmatprep.mubr.f32.mxu1 %v4200_v9  ;;  %3295 = vmatprep.subr.bf16.mxu1 %v4368_v20  ;;  %v415_v12 = vld [vmem:[#allocation6 + $0x1f0] sm:$0xff] }
  0x7d   : > { %3343 = vmatprep.subr.bf16.mxu0 %v4445_v51  ;;  %v4565_v14 = vpack.c.bf16 %v415_v12, %v411_v11 }
  0x7e   : > { %3173 = vmatmul.mubr.msk.f32.vlgmr.msra.gmra.mrb[12].mxu1 %vm439_vm0, %v3172_v54 }
  0x7f   : > { %3297 = vmatpush1.bf16.msra.mxu1 %v4373_v22  ;;  %3345 = vmatpush1.bf16.msra.mxu0 %v4451_v55 }
  0x80   : > { %1019 = vmatprep.mubr.f32.mxu1 %v4200_v9  ;;  %3303 = vmatprep.subr.bf16.mxu1 %v4368_v20 }
  0x81   : > { %3347 = vmatprep.subr.bf16.mxu0 %v4456_v58 }
  0x82   : > { %3174 = vmatmul.mubr.msk.f32.vlgmr.msra.gmra.mrb[14].mxu1 %vm439_vm0, %v3172_v54  ;;  %v4544_v54 = vpack.c.bf16 %v400_v52, %v396_v50 }
  0x83   : > { %3305 = vmatpush1.bf16.msra.mxu1 %v4373_v22  ;;  %3349 = vmatpush1.bf16.msra.mxu0 %v4461_v61 }
  0x84   : > { %1166 = vmatprep.mubr.f32.mxu1 %v4200_v9  ;;  %3311 = vmatprep.subr.bf16.mxu1 %v4368_v20 }
  0x85   : > { %3351 = vmatprep.subr.bf16.mxu0 %v4466_v0 }
  0x86   : > { %3177 = vmatmul.mubr.msk.f32.vlgmr.msra.gmra.mrb[16].mxu1 %vm439_vm0, %v4376_v23  ;;  %v368_v23 = vld [vmem:[#allocation6 + $0x78] sm:$0xff] }
  0x87   : > { %3313 = vmatpush1.bf16.msra.mxu1 %v4373_v22  ;;  %3353 = vmatpush1.bf16.msra.mxu0 %v4471_v3 }
  0x88   : > { %1313 = vmatprep.mubr.f32.mxu1 %v4200_v9  ;;  %3319 = vmatprep.subr.bf16.mxu1 %v4368_v20 }
  0x89   : > { %3355 = vmatprep.subr.bf16.mxu0 %v4476_v6 }
  0x8a   : > { %3180 = vmatmul.mubr.msk.f32.vlgmr.msra.gmra.mrb[18].mxu1 %vm439_vm0, %v4386_v24  ;;  %v4504_v24 = vpack.c.bf16 %v359_v19, %v355_v18 }
  0x8b   : > { %3321 = vmatpush1.bf16.msra.mxu1 %v4373_v22  ;;  %3357 = vmatpush1.bf16.msra.mxu0 %v4482_v10 }
  0x8c   : > { %1460 = vmatprep.mubr.f32.mxu1 %v4200_v9  ;;  %3327 = vmatprep.subr.bf16.mxu1 %v4368_v20  ;;  %v4508_v20 = vpack.c.bf16 %v368_v23, %v364_v21 }
  0x8d   : > { %3359 = vmatprep.subr.bf16.mxu0 %v4487_v13 }
  0x8e   : > { %3183 = vmatmul.mubr.msk.f32.vlgmr.msra.gmra.mrb[20].mxu1 %vm439_vm0, %v4399_v28  ;;  %v4519_v28 = vpack.c.bf16 %v376_v29, %v372_v27  ;;  %v419_v29 = vlaneseq }
  0x8f   : > { %3329 = vmatpush1.bf16.msra.mxu1 %v4373_v22  ;;  %3361 = vmatpush1.bf16.msra.mxu0 %v4493_v16  ;;  %v4515_v22 = vpack.c.bf16 %v367_v26, %v363_v25 }
  0x90   : > { %1607 = vmatprep.mubr.f32.mxu1 %v4200_v9  ;;  %3363 = vmatprep.subr.bf16.mxu1 %v4497_v17 }
  0x91   : > { %3395 = vmatprep.subr.bf16.mxu0 %v4405_v31 }
  0x92   : > { %1679 = vmatmul.mubr.f32.vlgmr.msra.gmra.mrb[8].mxu0 %v4200_v9  ;;  %3186 = vmatmul.mubr.msk.f32.vlgmr.msra.gmra.mrb[22].mxu1 %vm439_vm0, %v4413_v34  ;;  %v4525_v34 = vpack.c.bf16 %v375_v32, %v371_v30  ;;  %v420_v30 = vshrl.u32 %v419_v29, 7 }
  0x93   : > { %3365 = vmatpush1.bf16.msra.mxu1 %v4504_v24  ;;  %1749 = vmatprep.mubr.f32.mxu1 %v4200_v9 }
  0x94   : > { %3367 = vmatprep.subr.bf16.mxu1 %v4508_v20  ;;  %3397 = vmatpush1.bf16.msra.mxu0 %v4415_v35  ;;  %v421_v32 = vsub.s32 0, %v420_v30  ;;  %v425_v36 = vsub.s32 1, %v420_v30  ;;  %v429_v59 = vsub.s32 2, %v420_v30  ;;  %v433_v60 = vsub.s32 3, %v420_v30 }
  0x95   : > { %3399 = vmatprep.subr.bf16.mxu0 %v4421_v38  ;;  %1848 = vmatprep.mubr.f32.mxu0 %v4200_v9 }
  0x96   : > { %v4607_v39 = vrot.slane %v352_v33, %v421_v32  ;;  %v4609_v40 = vrot.slane %v352_v33, %v425_v36  ;;  %v4613_v4 = vrot.slane %v352_v33, %v429_v59  ;;  %v4615_v11 = vrot.slane %v352_v33, %v433_v60 }
  0x97   : > { %3369 = vmatpush1.bf16.msra.mxu1 %v4515_v22 }
  0x98   : > { %3371 = vmatprep.subr.bf16.mxu1 %v4519_v28  ;;  %3401 = vmatpush1.bf16.msra.mxu0 %v4429_v42 }
  0x99   : > { %3403 = vmatprep.subr.bf16.mxu0 %v4434_v45 }
  0x9b   : > { %3373 = vmatpush1.bf16.msra.mxu1 %v4525_v34 }
  0x9c   : > { %3375 = vmatprep.subr.bf16.mxu1 %v4528_v37  ;;  %3405 = vmatpush1.bf16.msra.mxu0 %v4440_v48 }
  0x9d   : > { %3407 = vmatprep.subr.bf16.mxu0 %v4445_v51 }
  0x9f   : > { %3377 = vmatpush1.bf16.msra.mxu1 %v4533_v44 }
  0xa0   : > { %3379 = vmatprep.subr.bf16.mxu1 %v4536_v46  ;;  %3409 = vmatpush1.bf16.msra.mxu0 %v4451_v55 }
  0xa1   : > { %3411 = vmatprep.subr.bf16.mxu0 %v4456_v58 }
  0xa3   : > { %3381 = vmatpush1.bf16.msra.mxu1 %v4541_v53 }
  0xa4   : > { %3383 = vmatprep.subr.bf16.mxu1 %v4544_v54  ;;  %3413 = vmatpush1.bf16.msra.mxu0 %v4461_v61 }
  0xa5   : > { %3415 = vmatprep.subr.bf16.mxu0 %v4466_v0 }
  0xa7   : > { %3385 = vmatpush1.bf16.msra.mxu1 %v4549_v62 }
  0xa8   : > { %3387 = vmatprep.subr.bf16.mxu1 %v4552_v63  ;;  %3417 = vmatpush1.bf16.msra.mxu0 %v4471_v3 }
  0xa9   : > { %3419 = vmatprep.subr.bf16.mxu0 %v4476_v6 }
  0xab   : > { %3389 = vmatpush1.bf16.msra.mxu1 %v4557_v7 }
  0xac   : > { %3391 = vmatprep.subr.bf16.mxu1 %v4560_v8  ;;  %3421 = vmatpush1.bf16.msra.mxu0 %v4482_v10 }
  0xad   : > { %3423 = vmatprep.subr.bf16.mxu0 %v4487_v13 }
  0xaf   : > { %3393 = vmatpush1.bf16.msra.mxu1 %v4565_v14 }
  0xb0   : > { %3427 = vmatprep.subr.bf16.mxu1 %v4497_v17  ;;  %3425 = vmatpush1.bf16.msra.mxu0 %v4493_v16 }
  0xb1   : > { %3459 = vmatprep.subr.bf16.mxu0 %v4405_v31 }
  0xb2   : > { %1750 = vmatmul.mubr.f32.vlgmr.msra.gmra.mrb[2].mxu1 %v4200_v9 }
  0xb3   : > { %3429 = vmatpush1.bf16.msra.mxu1 %v4504_v24  ;;  %1919 = vmatprep.mubr.f32.mxu1 %v4200_v9 }
  0xb4   : > { %3431 = vmatprep.subr.bf16.mxu1 %v4508_v20 }
  0xb7   : > { %3433 = vmatpush1.bf16.msra.mxu1 %v4515_v22 }
  0xb8   : > { %3435 = vmatprep.subr.bf16.mxu1 %v4519_v28 }
  0xbb   : > { %3437 = vmatpush1.bf16.msra.mxu1 %v4525_v34 }
  0xbc   : > { %3439 = vmatprep.subr.bf16.mxu1 %v4528_v37 }
  0xbf   : > { %3441 = vmatpush1.bf16.msra.mxu1 %v4533_v44 }
  0xc0   : > { %3443 = vmatprep.subr.bf16.mxu1 %v4536_v46 }
  0xc3   : > { %3445 = vmatpush1.bf16.msra.mxu1 %v4541_v53 }
  0xc4   : > { %3447 = vmatprep.subr.bf16.mxu1 %v4544_v54 }
  0xc7   : > { %3449 = vmatpush1.bf16.msra.mxu1 %v4549_v62 }
  0xc8   : > { %3451 = vmatprep.subr.bf16.mxu1 %v4552_v63 }
  0xcb   : > { %3453 = vmatpush1.bf16.msra.mxu1 %v4557_v7 }
  0xcc   : > { %3455 = vmatprep.subr.bf16.mxu1 %v4560_v8 }
  0xcf   : > { %3457 = vmatpush1.bf16.msra.mxu1 %v4565_v14 }
  0xd0   : > { %3491 = vmatprep.subr.bf16.mxu1 %v4497_v17 }
 0x139   : > { %v509_v15 = vpop.f32.mrb[0].mxu1 }
 0x13a   : > { %v511_v18 = vpop.f32.mrb[1].mxu1  ;;  %v510_v41 = vadd.f32 %v509_v15, %v4607_v39 }
 0x13b   : > { %v512_v43 = vadd.f32 %v511_v18, %v4609_v40 }
 0x141   : > { %v4592_v19 = vpop.f32.mrb[4].mxu1 }
 0x142   : > { %v4594_v21 = vpop.f32.mrb[5].mxu1  ;;  %v657_v60 = vadd.f32 %v4592_v19, %v4607_v39 }
 0x149   : > { %v4596_v23 = vpop.f32.mrb[8].mxu1 }
 0x14a   : > { %v4598_v25 = vpop.f32.mrb[9].mxu1 }
 0x151   : > { %v4600_v26 = vpop.f32.mrb[12].mxu1 }
 0x152   : > { %v4602_v27 = vpop.f32.mrb[13].mxu1 }
 0x165   : > { %v1680_v47 = vpop.f32.mrb[8].mxu0 }
 0x166   : > { %v1756_v49 = vadd.f32 %v1680_v47, %v510_v41  ;;  %v1682_v50 = vpop.f32.mrb[9].mxu0 }
 0x167   : > { %v1757_v52 = vadd.f32 %v1682_v50, %v512_v43 }
 0x168   : > { %v3187_v57 = vmul.f32 -1.442695, %v1756_v49 }
 0x169   : > { %v3188_v56 = vmul.f32 -1.442695, %v1757_v52 }
 0x16b   : > { %3980 = vpow2.f32 %v3188_v56 }
 0x16c   : > { %3982 = vpow2.f32 %v3187_v57 }
 0x175   : > { %v3981_v1 = vpop.eup %3980 }
 0x176   : > { %v3983_v2 = vpop.eup %3982  ;;  %v1770_v5 = vadd.f32 1.0, %v3981_v1  ;;  %v659_v1 = vadd.f32 %v4594_v21, %v4609_v40 }
 0x177   : > { %v1769_v12 = vadd.f32 1.0, %v3983_v2 }
 0x178   : > { %3984 = vrcp.f32 %v1770_v5 }
 0x179   : > { %3986 = vrcp.f32 %v1769_v12 }
 0x182   : > { %v3985_v30 = vpop.eup %3984 }
 0x183   : > { %v3987_v41 = vpop.eup %3986  ;;  %v1779_v49 = vmul.f32 0.0, %v3985_v30 }
 0x185   : > { %v1751_v15 = vpop.f32.mrb[2].mxu1 }
 0x186   : > { %v3870_v18 = vadd.f32 %v1751_v15, %v4613_v4  ;;  %v1753_v29 = vpop.f32.mrb[3].mxu1 }
 0x187   : > { %v3871_v32 = vadd.f32 %v1753_v29, %v4615_v11 }
 0x188   : > { %v3189_v36 = vmul.f32 -1.442695, %v3870_v18 }
 0x189   : > { %3988 = vtanh.f32 %v3871_v32 }
 0x18a   : > { %3990 = vpow2.f32 %v3189_v36 }
 0x193   : > { %v3989_v43 = vpop.eup %3988 }
 0x194   : > { %v3991_v47 = vpop.eup %3990  ;;  %v1780_v50 = vmul.f32 %v3989_v43, %v3987_v41 }
 0x195   : > { %v1771_v33 = vadd.f32 1.0, %v3991_v47 }
 0x196   : > { %v4619_v52 = vadd.f32 %v1780_v50, %v1779_v49 }
 0x197   : > { %3992 = vrcp.f32 %v1771_v33 }
 0x198   : > { %3994 = vtanh.f32 %v4619_v52 }
 0x1a1   : > { %v3993_v56 = vpop.eup %3992 }
 0x1a2   : > { %v3995_v57 = vpop.eup %3994 }
 0x1a3   : > { %v1783_v59 = vmul.f32 %v3995_v57, %v3993_v56 }
 0x1a5   : > { %1849 = vmatmul.mubr.f32.vlgmr.msra.gmra.mrb[10].mxu0 %v1783_v59  ;;  %1920 = vmatmul.mubr.f32.vlgmr.msra.gmra.mrb[6].mxu1 %v1783_v59 }
 0x1a6   : > { %3461 = vmatpush1.bf16.msra.mxu0 %v4415_v35  ;;  %3493 = vmatpush1.bf16.msra.mxu1 %v4504_v24 }
 0x1a7   : > { %3463 = vmatprep.subr.bf16.mxu0 %v4421_v38  ;;  %3495 = vmatprep.subr.bf16.mxu1 %v4508_v20 }
 0x1a8   : > { %2018 = vmatprep.mubr.f32.mxu0 %v4200_v9  ;;  %2089 = vmatprep.mubr.f32.mxu1 %v4200_v9 }
 0x1aa   : > { %3465 = vmatpush1.bf16.msra.mxu0 %v4429_v42  ;;  %3497 = vmatpush1.bf16.msra.mxu1 %v4515_v22 }
 0x1ab   : > { %3467 = vmatprep.subr.bf16.mxu0 %v4434_v45  ;;  %3499 = vmatprep.subr.bf16.mxu1 %v4519_v28 }
 0x1ae   : > { %3469 = vmatpush1.bf16.msra.mxu0 %v4440_v48  ;;  %3501 = vmatpush1.bf16.msra.mxu1 %v4525_v34 }
 0x1af   : > { %3471 = vmatprep.subr.bf16.mxu0 %v4445_v51  ;;  %3503 = vmatprep.subr.bf16.mxu1 %v4528_v37 }
 0x1b2   : > { %3473 = vmatpush1.bf16.msra.mxu0 %v4451_v55  ;;  %3505 = vmatpush1.bf16.msra.mxu1 %v4533_v44 }
 0x1b3   : > { %3475 = vmatprep.subr.bf16.mxu0 %v4456_v58  ;;  %3507 = vmatprep.subr.bf16.mxu1 %v4536_v46 }
 0x1b6   : > { %3477 = vmatpush1.bf16.msra.mxu0 %v4461_v61  ;;  %3509 = vmatpush1.bf16.msra.mxu1 %v4541_v53 }
 0x1b7   : > { %3479 = vmatprep.subr.bf16.mxu0 %v4466_v0  ;;  %3511 = vmatprep.subr.bf16.mxu1 %v4544_v54 }
 0x1ba   : > { %3481 = vmatpush1.bf16.msra.mxu0 %v4471_v3  ;;  %3513 = vmatpush1.bf16.msra.mxu1 %v4549_v62 }
 0x1bb   : > { %3483 = vmatprep.subr.bf16.mxu0 %v4476_v6  ;;  %3515 = vmatprep.subr.bf16.mxu1 %v4552_v63 }
 0x1be   : > { %3485 = vmatpush1.bf16.msra.mxu0 %v4482_v10  ;;  %3517 = vmatpush1.bf16.msra.mxu1 %v4557_v7 }
 0x1bf   : > { %3487 = vmatprep.subr.bf16.mxu0 %v4487_v13  ;;  %3519 = vmatprep.subr.bf16.mxu1 %v4560_v8 }
 0x1c2   : > { %3489 = vmatpush1.bf16.msra.mxu0 %v4493_v16  ;;  %3521 = vmatpush1.bf16.msra.mxu1 %v4565_v14 }
 0x1c3   : > { %3523 = vmatprep.subr.bf16.mxu0 %v4405_v31  ;;  %3555 = vmatprep.subr.bf16.mxu1 %v4497_v17 }
 0x278   : > { %v1850_v2 = vpop.f32.mrb[10].mxu0  ;;  %v1921_v5 = vpop.f32.mrb[6].mxu1 }
 0x279   : > { %v1926_v12 = vadd.f32 %v1850_v2, %v657_v60  ;;  %v1852_v15 = vpop.f32.mrb[11].mxu0  ;;  %v1923_v18 = vpop.f32.mrb[7].mxu1  ;;  %v3876_v30 = vadd.f32 %v1921_v5, %v4613_v4 }
 0x27a   : > { %v1927_v29 = vadd.f32 %v1852_v15, %v659_v1  ;;  %v3877_v41 = vadd.f32 %v1923_v18, %v4615_v11  ;;  %v806_v18 = vadd.f32 %v4598_v25, %v4609_v40 }
 0x27b   : > { %v3190_v32 = vmul.f32 -1.442695, %v1926_v12  ;;  %v3192_v43 = vmul.f32 -1.442695, %v3876_v30 }
 0x27c   : > { %v3191_v36 = vmul.f32 -1.442695, %v1927_v29 }
 0x27d   : > { %3996 = vpow2.f32 %v3190_v32 }
 0x27e   : > { %3998 = vpow2.f32 %v3191_v36 }
 0x27f   : > { %4000 = vtanh.f32 %v3877_v41 }
 0x280   : > { %4002 = vpow2.f32 %v3192_v43 }
 0x287   : > { %v3997_v47 = vpop.eup %3996 }
 0x288   : > { %v1939_v19 = vadd.f32 1.0, %v3997_v47  ;;  %v3999_v49 = vpop.eup %3998 }
 0x289   : > { %v1940_v21 = vadd.f32 1.0, %v3999_v49  ;;  %v4001_v50 = vpop.eup %4000 }
 0x28a   : > { %4004 = vrcp.f32 %v1939_v19  ;;  %v4003_v33 = vpop.eup %4002 }
 0x28b   : > { %4006 = vrcp.f32 %v1940_v21  ;;  %v1941_v60 = vadd.f32 1.0, %v4003_v33 }
 0x28d   : > { %4008 = vrcp.f32 %v1941_v60 }
 0x294   : > { %v4005_v56 = vpop.eup %4004 }
 0x295   : > { %v1950_v57 = vmul.f32 %v4005_v56, %v4001_v50  ;;  %v4007_v59 = vpop.eup %4006 }
 0x296   : > { %v1949_v1 = vmul.f32 %v4007_v59, %v4619_v52  ;;  %v804_v52 = vadd.f32 %v4596_v23, %v4607_v39 }
 0x297   : > { %v4009_v5 = vpop.eup %4008 }
 0x298   : > { %v4663_v2 = vadd.f32 %v1950_v57, %v1949_v1 }
 0x29a   : > { %4010 = vtanh.f32 %v4663_v2 }
 0x2a4   : > { %v4011_v12 = vpop.eup %4010 }
 0x2a5   : > { %v1953_v15 = vmul.f32 %v4011_v12, %v4009_v5 }
 0x2a7   : > { %2019 = vmatmul.mubr.f32.vlgmr.msra.gmra.mrb[12].mxu0 %v1953_v15  ;;  %2090 = vmatmul.mubr.f32.vlgmr.msra.gmra.mrb[10].mxu1 %v1953_v15 }
 0x2a8   : > { %3525 = vmatpush1.bf16.msra.mxu0 %v4415_v35  ;;  %3557 = vmatpush1.bf16.msra.mxu1 %v4504_v24 }
 0x2a9   : > { %3527 = vmatprep.subr.bf16.mxu0 %v4421_v38  ;;  %3559 = vmatprep.subr.bf16.mxu1 %v4508_v20 }
 0x2aa   : > { %2188 = vmatprep.mubr.f32.mxu0 %v4200_v9  ;;  %2259 = vmatprep.mubr.f32.mxu1 %v4200_v9 }
 0x2ac   : > { %3529 = vmatpush1.bf16.msra.mxu0 %v4429_v42  ;;  %3561 = vmatpush1.bf16.msra.mxu1 %v4515_v22 }
 0x2ad   : > { %3531 = vmatprep.subr.bf16.mxu0 %v4434_v45  ;;  %3563 = vmatprep.subr.bf16.mxu1 %v4519_v28 }
 0x2b0   : > { %3533 = vmatpush1.bf16.msra.mxu0 %v4440_v48  ;;  %3565 = vmatpush1.bf16.msra.mxu1 %v4525_v34 }
 0x2b1   : > { %3535 = vmatprep.subr.bf16.mxu0 %v4445_v51  ;;  %3567 = vmatprep.subr.bf16.mxu1 %v4528_v37 }
 0x2b4   : > { %3537 = vmatpush1.bf16.msra.mxu0 %v4451_v55  ;;  %3569 = vmatpush1.bf16.msra.mxu1 %v4533_v44 }
 0x2b5   : > { %3539 = vmatprep.subr.bf16.mxu0 %v4456_v58  ;;  %3571 = vmatprep.subr.bf16.mxu1 %v4536_v46 }
 0x2b8   : > { %3541 = vmatpush1.bf16.msra.mxu0 %v4461_v61  ;;  %3573 = vmatpush1.bf16.msra.mxu1 %v4541_v53 }
 0x2b9   : > { %3543 = vmatprep.subr.bf16.mxu0 %v4466_v0  ;;  %3575 = vmatprep.subr.bf16.mxu1 %v4544_v54 }
 0x2bc   : > { %3545 = vmatpush1.bf16.msra.mxu0 %v4471_v3  ;;  %3577 = vmatpush1.bf16.msra.mxu1 %v4549_v62 }
 0x2bd   : > { %3547 = vmatprep.subr.bf16.mxu0 %v4476_v6  ;;  %3579 = vmatprep.subr.bf16.mxu1 %v4552_v63 }
 0x2c0   : > { %3549 = vmatpush1.bf16.msra.mxu0 %v4482_v10  ;;  %3581 = vmatpush1.bf16.msra.mxu1 %v4557_v7 }
 0x2c1   : > { %3551 = vmatprep.subr.bf16.mxu0 %v4487_v13  ;;  %3583 = vmatprep.subr.bf16.mxu1 %v4560_v8 }
 0x2c4   : > { %3553 = vmatpush1.bf16.msra.mxu0 %v4493_v16  ;;  %3585 = vmatpush1.bf16.msra.mxu1 %v4565_v14 }
 0x2c5   : > { %3587 = vmatprep.subr.bf16.mxu0 %v4405_v31  ;;  %3619 = vmatprep.subr.bf16.mxu1 %v4497_v17 }
 0x37a   : > { %v2020_v29 = vpop.f32.mrb[12].mxu0  ;;  %v2091_v32 = vpop.f32.mrb[10].mxu1 }
 0x37b   : > { %v2096_v36 = vadd.f32 %v2020_v29, %v804_v52  ;;  %v2022_v30 = vpop.f32.mrb[13].mxu0  ;;  %v2093_v41 = vpop.f32.mrb[11].mxu1  ;;  %v3882_v49 = vadd.f32 %v2091_v32, %v4613_v4 }
 0x37c   : > { %v2097_v43 = vadd.f32 %v2022_v30, %v806_v18  ;;  %v3883_v21 = vadd.f32 %v2093_v41, %v4615_v11 }
 0x37d   : > { %v3193_v47 = vmul.f32 -1.442695, %v2096_v36  ;;  %v3195_v50 = vmul.f32 -1.442695, %v3882_v49  ;;  %v953_v36 = vadd.f32 %v4602_v27, %v4609_v40 }
 0x37e   : > { %v3194_v19 = vmul.f32 -1.442695, %v2097_v43 }
 0x37f   : > { %4012 = vpow2.f32 %v3193_v47 }
 0x380   : > { %4014 = vpow2.f32 %v3194_v19 }
 0x381   : > { %4016 = vtanh.f32 %v3883_v21 }
 0x382   : > { %4018 = vpow2.f32 %v3195_v50 }
 0x389   : > { %v4013_v33 = vpop.eup %4012 }
 0x38a   : > { %v2109_v23 = vadd.f32 1.0, %v4013_v33  ;;  %v4015_v56 = vpop.eup %4014 }
 0x38b   : > { %v2110_v25 = vadd.f32 1.0, %v4015_v56  ;;  %v4017_v57 = vpop.eup %4016 }
 0x38c   : > { %4020 = vrcp.f32 %v2109_v23  ;;  %v4019_v59 = vpop.eup %4018 }
 0x38d   : > { %4022 = vrcp.f32 %v2110_v25  ;;  %v2111_v12 = vadd.f32 1.0, %v4019_v59 }
 0x38f   : > { %4024 = vrcp.f32 %v2111_v12 }
 0x396   : > { %v4021_v60 = vpop.eup %4020 }
 0x397   : > { %v2120_v1 = vmul.f32 %v4021_v60, %v4017_v57  ;;  %v4023_v5 = vpop.eup %4022 }
 0x398   : > { %v2119_v15 = vmul.f32 %v4023_v5, %v4663_v2  ;;  %v951_v2 = vadd.f32 %v4600_v26, %v4607_v39 }
 0x399   : > { %v4025_v18 = vpop.eup %4024 }
 0x39a   : > { %v4707_v52 = vadd.f32 %v2120_v1, %v2119_v15 }
 0x39c   : > { %4026 = vtanh.f32 %v4707_v52 }
 0x3a6   : > { %v4027_v29 = vpop.eup %4026 }
 0x3a7   : > { %v2123_v32 = vmul.f32 %v4027_v29, %v4025_v18 }
 0x3a9   : > { %2189 = vmatmul.mubr.f32.vlgmr.msra.gmra.mrb[14].mxu0 %v2123_v32  ;;  %2260 = vmatmul.mubr.f32.vlgmr.msra.gmra.mrb[14].mxu1 %v2123_v32 }
 0x3aa   : > { %3589 = vmatpush1.bf16.msra.mxu0 %v4415_v35  ;;  %3621 = vmatpush1.bf16.msra.mxu1 %v4504_v24 }
 0x3ab   : > { %3591 = vmatprep.subr.bf16.mxu0 %v4421_v38  ;;  %3623 = vmatprep.subr.bf16.mxu1 %v4508_v20 }
 0x3ac   : > { %2358 = vmatprep.mubr.f32.mxu0 %v4200_v9  ;;  %2429 = vmatprep.mubr.f32.mxu1 %v4200_v9 }
 0x3ae   : > { %3593 = vmatpush1.bf16.msra.mxu0 %v4429_v42  ;;  %3625 = vmatpush1.bf16.msra.mxu1 %v4515_v22 }
 0x3af   : > { %3595 = vmatprep.subr.bf16.mxu0 %v4434_v45  ;;  %3627 = vmatprep.subr.bf16.mxu1 %v4519_v28 }
 0x3b2   : > { %3597 = vmatpush1.bf16.msra.mxu0 %v4440_v48  ;;  %3629 = vmatpush1.bf16.msra.mxu1 %v4525_v34 }
 0x3b3   : > { %3599 = vmatprep.subr.bf16.mxu0 %v4445_v51  ;;  %3631 = vmatprep.subr.bf16.mxu1 %v4528_v37 }
 0x3b6   : > { %3601 = vmatpush1.bf16.msra.mxu0 %v4451_v55  ;;  %3633 = vmatpush1.bf16.msra.mxu1 %v4533_v44 }
 0x3b7   : > { %3603 = vmatprep.subr.bf16.mxu0 %v4456_v58  ;;  %3635 = vmatprep.subr.bf16.mxu1 %v4536_v46 }
 0x3ba   : > { %3605 = vmatpush1.bf16.msra.mxu0 %v4461_v61  ;;  %3637 = vmatpush1.bf16.msra.mxu1 %v4541_v53 }
 0x3bb   : > { %3607 = vmatprep.subr.bf16.mxu0 %v4466_v0  ;;  %3639 = vmatprep.subr.bf16.mxu1 %v4544_v54 }
 0x3be   : > { %3609 = vmatpush1.bf16.msra.mxu0 %v4471_v3  ;;  %3641 = vmatpush1.bf16.msra.mxu1 %v4549_v62 }
 0x3bf   : > { %3611 = vmatprep.subr.bf16.mxu0 %v4476_v6  ;;  %3643 = vmatprep.subr.bf16.mxu1 %v4552_v63 }
 0x3c2   : > { %3613 = vmatpush1.bf16.msra.mxu0 %v4482_v10  ;;  %3645 = vmatpush1.bf16.msra.mxu1 %v4557_v7 }
 0x3c3   : > { %3615 = vmatprep.subr.bf16.mxu0 %v4487_v13  ;;  %3647 = vmatprep.subr.bf16.mxu1 %v4560_v8 }
 0x3c6   : > { %3617 = vmatpush1.bf16.msra.mxu0 %v4493_v16  ;;  %3649 = vmatpush1.bf16.msra.mxu1 %v4565_v14 }
 0x3c7   : > { %3651 = vmatprep.subr.bf16.mxu0 %v4405_v31  ;;  %3683 = vmatprep.subr.bf16.mxu1 %v4497_v17 }
 0x47c   : > { %v2190_v30 = vpop.f32.mrb[14].mxu0  ;;  %v2261_v41 = vpop.f32.mrb[14].mxu1 }
 0x47d   : > { %v2266_v43 = vadd.f32 %v2190_v30, %v951_v2  ;;  %v2192_v47 = vpop.f32.mrb[15].mxu0  ;;  %v2263_v19 = vpop.f32.mrb[15].mxu1  ;;  %v3888_v33 = vadd.f32 %v2261_v41, %v4613_v4 }
 0x47e   : > { %v2267_v49 = vadd.f32 %v2192_v47, %v953_v36  ;;  %v3889_v23 = vadd.f32 %v2263_v19, %v4615_v11 }
 0x47f   : > { %v3196_v21 = vmul.f32 -1.442695, %v2266_v43  ;;  %v3198_v56 = vmul.f32 -1.442695, %v3888_v33 }
 0x480   : > { %v3197_v50 = vmul.f32 -1.442695, %v2267_v49 }
 0x481   : > { %4028 = vpow2.f32 %v3196_v21 }
 0x482   : > { %4030 = vpow2.f32 %v3197_v50 }
 0x483   : > { %4032 = vtanh.f32 %v3889_v23 }
 0x484   : > { %4034 = vpow2.f32 %v3198_v56 }
 0x48b   : > { %v4029_v25 = vpop.eup %4028 }
 0x48c   : > { %v2279_v26 = vadd.f32 1.0, %v4029_v25  ;;  %v4031_v57 = vpop.eup %4030 }
 0x48d   : > { %v2280_v27 = vadd.f32 1.0, %v4031_v57  ;;  %v4033_v59 = vpop.eup %4032 }
 0x48e   : > { %4036 = vrcp.f32 %v2279_v26  ;;  %v4035_v60 = vpop.eup %4034 }
 0x48f   : > { %4038 = vrcp.f32 %v2280_v27  ;;  %v2281_v15 = vadd.f32 1.0, %v4035_v60 }
 0x491   : > { %4040 = vrcp.f32 %v2281_v15 }
 0x498   : > { %v4037_v1 = vpop.eup %4036 }
 0x499   : > { %v2290_v5 = vmul.f32 %v4037_v1, %v4033_v59  ;;  %v4039_v12 = vpop.eup %4038 }
 0x49a   : > { %v2289_v18 = vmul.f32 %v4039_v12, %v4707_v52 }
 0x49b   : > { %v4041_v32 = vpop.eup %4040 }
 0x49c   : > { %v4751_v29 = vadd.f32 %v2290_v5, %v2289_v18 }
 0x49e   : > { %4042 = vtanh.f32 %v4751_v29 }
 0x4a8   : > { %v4043_v2 = vpop.eup %4042 }
 0x4a9   : > { %v2293_v36 = vmul.f32 %v4043_v2, %v4041_v32 }
 0x4ab   : > { %2359 = vmatmul.mubr.f32.vlgmr.msra.gmra.mrb[0].mxu0 %v2293_v36  ;;  %2430 = vmatmul.mubr.f32.vlgmr.msra.gmra.mrb[16].mxu1 %v2293_v36 }
 0x4ac   : > { %3653 = vmatpush1.bf16.msra.mxu0 %v4415_v35  ;;  %3685 = vmatpush1.bf16.msra.mxu1 %v4504_v24 }
 0x4ad   : > { %3655 = vmatprep.subr.bf16.mxu0 %v4421_v38  ;;  %3687 = vmatprep.subr.bf16.mxu1 %v4508_v20 }
 0x4ae   : > { %2528 = vmatprep.mubr.f32.mxu0 %v4200_v9  ;;  %2599 = vmatprep.mubr.f32.mxu1 %v4200_v9 }
 0x4b0   : > { %3657 = vmatpush1.bf16.msra.mxu0 %v4429_v42  ;;  %3689 = vmatpush1.bf16.msra.mxu1 %v4515_v22 }
 0x4b1   : > { %3659 = vmatprep.subr.bf16.mxu0 %v4434_v45  ;;  %3691 = vmatprep.subr.bf16.mxu1 %v4519_v28 }
 0x4b4   : > { %3661 = vmatpush1.bf16.msra.mxu0 %v4440_v48  ;;  %3693 = vmatpush1.bf16.msra.mxu1 %v4525_v34 }
 0x4b5   : > { %3663 = vmatprep.subr.bf16.mxu0 %v4445_v51  ;;  %3695 = vmatprep.subr.bf16.mxu1 %v4528_v37 }
 0x4b8   : > { %3665 = vmatpush1.bf16.msra.mxu0 %v4451_v55  ;;  %3697 = vmatpush1.bf16.msra.mxu1 %v4533_v44 }
 0x4b9   : > { %3667 = vmatprep.subr.bf16.mxu0 %v4456_v58  ;;  %3699 = vmatprep.subr.bf16.mxu1 %v4536_v46 }
 0x4bc   : > { %3669 = vmatpush1.bf16.msra.mxu0 %v4461_v61  ;;  %3701 = vmatpush1.bf16.msra.mxu1 %v4541_v53 }
 0x4bd   : > { %3671 = vmatprep.subr.bf16.mxu0 %v4466_v0  ;;  %3703 = vmatprep.subr.bf16.mxu1 %v4544_v54 }
 0x4c0   : > { %3673 = vmatpush1.bf16.msra.mxu0 %v4471_v3  ;;  %3705 = vmatpush1.bf16.msra.mxu1 %v4549_v62 }
 0x4c1   : > { %3675 = vmatprep.subr.bf16.mxu0 %v4476_v6  ;;  %3707 = vmatprep.subr.bf16.mxu1 %v4552_v63 }
 0x4c4   : > { %3677 = vmatpush1.bf16.msra.mxu0 %v4482_v10  ;;  %3709 = vmatpush1.bf16.msra.mxu1 %v4557_v7 }
 0x4c5   : > { %3679 = vmatprep.subr.bf16.mxu0 %v4487_v13  ;;  %3711 = vmatprep.subr.bf16.mxu1 %v4560_v8 }
 0x4c8   : > { %3681 = vmatpush1.bf16.msra.mxu0 %v4493_v16  ;;  %3713 = vmatpush1.bf16.msra.mxu1 %v4565_v14 }
 0x4c9   : > { %3715 = vmatprep.subr.bf16.mxu0 %v4405_v31  ;;  %3747 = vmatprep.subr.bf16.mxu1 %v4497_v17 }
 0x57e   : > { %v2360_v52 = vpop.f32.mrb[0].mxu0  ;;  %v2431_v30 = vpop.f32.mrb[16].mxu1 }
 0x57f   : > { %v3890_v41 = vadd.f32 %v2360_v52, %v4607_v39  ;;  %v2362_v43 = vpop.f32.mrb[1].mxu0  ;;  %v2433_v47 = vpop.f32.mrb[17].mxu1  ;;  %v3892_v50 = vadd.f32 %v2431_v30, %v4613_v4 }
 0x580   : > { %v3891_v19 = vadd.f32 %v2362_v43, %v4609_v40  ;;  %v3893_v33 = vadd.f32 %v2433_v47, %v4615_v11 }
 0x581   : > { %v3199_v49 = vmul.f32 -1.442695, %v3890_v41  ;;  %v3201_v23 = vmul.f32 -1.442695, %v3892_v50 }
 0x582   : > { %v3200_v21 = vmul.f32 -1.442695, %v3891_v19 }
 0x583   : > { %4044 = vpow2.f32 %v3199_v49 }
 0x584   : > { %4046 = vpow2.f32 %v3200_v21 }
 0x585   : > { %4048 = vtanh.f32 %v3893_v33 }
 0x586   : > { %4050 = vpow2.f32 %v3201_v23 }
 0x58d   : > { %v4045_v56 = vpop.eup %4044 }
 0x58e   : > { %v2449_v25 = vadd.f32 1.0, %v4045_v56  ;;  %v4047_v26 = vpop.eup %4046 }
 0x58f   : > { %v2450_v57 = vadd.f32 1.0, %v4047_v26  ;;  %v4049_v27 = vpop.eup %4048 }
 0x590   : > { %4052 = vrcp.f32 %v2449_v25  ;;  %v4051_v59 = vpop.eup %4050 }
 0x591   : > { %4054 = vrcp.f32 %v2450_v57  ;;  %v2451_v12 = vadd.f32 1.0, %v4051_v59 }
 0x593   : > { %4056 = vrcp.f32 %v2451_v12 }
 0x59a   : > { %v4053_v60 = vpop.eup %4052 }
 0x59b   : > { %v2460_v1 = vmul.f32 %v4053_v60, %v4049_v27  ;;  %v4055_v5 = vpop.eup %4054 }
 0x59c   : > { %v2459_v15 = vmul.f32 %v4055_v5, %v4751_v29 }
 0x59d   : > { %v4057_v32 = vpop.eup %4056 }
 0x59e   : > { %v4793_v18 = vadd.f32 %v2460_v1, %v2459_v15 }
 0x5a0   : > { %4058 = vtanh.f32 %v4793_v18 }
 0x5aa   : > { %v4059_v2 = vpop.eup %4058 }
 0x5ab   : > { %v2463_v36 = vmul.f32 %v4059_v2, %v4057_v32  ;;  %v2978_v2 = vld [vmem:[%s4951_s4 + $0x18] sm:$0xff] }
 0x5ad   : > { %2529 = vmatmul.mubr.f32.vlgmr.msra.gmra.mrb[2].mxu0 %v2463_v36  ;;  %2600 = vmatmul.mubr.f32.vlgmr.msra.gmra.mrb[18].mxu1 %v2463_v36 }
 0x5ae   : > { %3717 = vmatpush1.bf16.msra.mxu0 %v4415_v35  ;;  %3749 = vmatpush1.bf16.msra.mxu1 %v4504_v24 }
 0x5af   : > { %3719 = vmatprep.subr.bf16.mxu0 %v4421_v38  ;;  %3751 = vmatprep.subr.bf16.mxu1 %v4508_v20 }
 0x5b0   : > { %2698 = vmatprep.mubr.f32.mxu0 %v4200_v9  ;;  %2769 = vmatprep.mubr.f32.mxu1 %v4200_v9 }
 0x5b2   : > { %3721 = vmatpush1.bf16.msra.mxu0 %v4429_v42  ;;  %3753 = vmatpush1.bf16.msra.mxu1 %v4515_v22 }
 0x5b3   : > { %3723 = vmatprep.subr.bf16.mxu0 %v4434_v45  ;;  %3755 = vmatprep.subr.bf16.mxu1 %v4519_v28 }
 0x5b6   : > { %3725 = vmatpush1.bf16.msra.mxu0 %v4440_v48  ;;  %3757 = vmatpush1.bf16.msra.mxu1 %v4525_v34 }
 0x5b7   : > { %3727 = vmatprep.subr.bf16.mxu0 %v4445_v51  ;;  %3759 = vmatprep.subr.bf16.mxu1 %v4528_v37 }
 0x5ba   : > { %3729 = vmatpush1.bf16.msra.mxu0 %v4451_v55  ;;  %3761 = vmatpush1.bf16.msra.mxu1 %v4533_v44 }
 0x5bb   : > { %3731 = vmatprep.subr.bf16.mxu0 %v4456_v58  ;;  %3763 = vmatprep.subr.bf16.mxu1 %v4536_v46 }
 0x5be   : > { %3733 = vmatpush1.bf16.msra.mxu0 %v4461_v61  ;;  %3765 = vmatpush1.bf16.msra.mxu1 %v4541_v53 }
 0x5bf   : > { %3735 = vmatprep.subr.bf16.mxu0 %v4466_v0  ;;  %3767 = vmatprep.subr.bf16.mxu1 %v4544_v54 }
 0x5c2   : > { %3737 = vmatpush1.bf16.msra.mxu0 %v4471_v3  ;;  %3769 = vmatpush1.bf16.msra.mxu1 %v4549_v62 }
 0x5c3   : > { %3739 = vmatprep.subr.bf16.mxu0 %v4476_v6  ;;  %3771 = vmatprep.subr.bf16.mxu1 %v4552_v63 }
 0x5c6   : > { %3741 = vmatpush1.bf16.msra.mxu0 %v4482_v10  ;;  %3773 = vmatpush1.bf16.msra.mxu1 %v4557_v7 }
 0x5c7   : > { %3743 = vmatprep.subr.bf16.mxu0 %v4487_v13  ;;  %3775 = vmatprep.subr.bf16.mxu1 %v4560_v8 }
 0x5ca   : > { %3745 = vmatpush1.bf16.msra.mxu0 %v4493_v16  ;;  %3777 = vmatpush1.bf16.msra.mxu1 %v4565_v14 }
 0x5cb   : > { %3779 = vmatprep.subr.bf16.mxu0 %v4405_v31  ;;  %3811 = vmatprep.subr.bf16.mxu1 %v4497_v17 }
 0x680   : > { %v2530_v29 = vpop.f32.mrb[2].mxu0  ;;  %v2601_v52 = vpop.f32.mrb[18].mxu1 }
 0x681   : > { %v3894_v30 = vadd.f32 %v2530_v29, %v4607_v39  ;;  %v2532_v41 = vpop.f32.mrb[3].mxu0  ;;  %v2603_v43 = vpop.f32.mrb[19].mxu1  ;;  %v3896_v21 = vadd.f32 %v2601_v52, %v4613_v4  ;;  %v2979_v29 = vld [vmem:[%s4951_s4 + $0x20] sm:$0xff]  ;;  %v2980_v52 = vld [vmem:[%s4951_s4 + $0x28] sm:$0xff] }
 0x682   : > { %v3895_v47 = vadd.f32 %v2532_v41, %v4609_v40  ;;  %v3897_v50 = vadd.f32 %v2603_v43, %v4615_v11  ;;  %v2981_v41 = vld [vmem:[%s4951_s4 + $0x30] sm:$0xff]  ;;  %v2982_v43 = vld [vmem:[%s4951_s4 + $0x38] sm:$0xff] }
 0x683   : > { %v3202_v19 = vmul.f32 -1.442695, %v3894_v30  ;;  %v3204_v33 = vmul.f32 -1.442695, %v3896_v21  ;;  %v3849_v30 = vpack.c.bf16 %v2980_v52, %v2979_v29 }
 0x684   : > { %v3203_v49 = vmul.f32 -1.442695, %v3895_v47  ;;  %v3852_v47 = vpack.c.bf16 %v2982_v43, %v2981_v41 }
 0x685   : > { %4060 = vpow2.f32 %v3202_v19  ;;  %v2983_v19 = vld [vmem:[%s4951_s4 + $0x40] sm:$0xff] }
 0x686   : > { %4062 = vpow2.f32 %v3203_v49  ;;  %v2984_v49 = vld [vmem:[%s4951_s4 + $0x48] sm:$0xff] }
 0x687   : > { %4064 = vtanh.f32 %v3897_v50  ;;  %v3855_v21 = vpack.c.bf16 %v2984_v49, %v2983_v19  ;;  %v2985_v50 = vld [vmem:[%s4951_s4 + $0x50] sm:$0xff] }
 0x688   : > { %4066 = vpow2.f32 %v3204_v33  ;;  %v2986_v33 = vld [vmem:[%s4951_s4 + $0x58] sm:$0xff] }
 0x68f   : > { %v4061_v31 = vpop.eup %4060 }
 0x690   : > { %v2619_v23 = vadd.f32 1.0, %v4061_v31  ;;  %v4063_v17 = vpop.eup %4062  ;;  %v3858_v31 = vpack.c.bf16 %v2986_v33, %v2985_v50 }
 0x691   : > { %v2620_v56 = vadd.f32 1.0, %v4063_v17  ;;  %v4065_v25 = vpop.eup %4064  ;;  %v2988_v17 = vld [vmem:[%s4951_s4 + $0x68] sm:$0xff] }
 0x692   : > { %4068 = vrcp.f32 %v2619_v23  ;;  %v4067_v26 = vpop.eup %4066  ;;  %v2987_v23 = vld [vmem:[%s4951_s4 + $0x60] sm:$0xff] }
 0x693   : > { %4070 = vrcp.f32 %v2620_v56  ;;  %v2621_v60 = vadd.f32 1.0, %v4067_v26  ;;  %v3861_v56 = vpack.c.bf16 %v2988_v17, %v2987_v23  ;;  %v2990_v26 = vld [vmem:[%s4951_s4 + $0x78] sm:$0xff] }
 0x695   : > { %4072 = vrcp.f32 %v2621_v60 }
 0x69c   : > { %v4069_v57 = vpop.eup %4068 }
 0x69d   : > { %v2630_v27 = vmul.f32 %v4069_v57, %v4065_v25  ;;  %v4071_v59 = vpop.eup %4070  ;;  %v2989_v25 = vld [vmem:[%s4951_s4 + $0x70] sm:$0xff] }
 0x69e   : > { %v2629_v1 = vmul.f32 %v4071_v59, %v4793_v18  ;;  %v2977_v18 = vld [vmem:[%s4951_s4 + $0x10] sm:$0xff]  ;;  %v3864_v57 = vpack.c.bf16 %v2990_v26, %v2989_v25 }
 0x69f   : > { %v4073_v12 = vpop.eup %4072  ;;  %v3846_v36 = vpack.c.bf16 %v2978_v2, %v2977_v18 }
 0x6a0   : > { %v4835_v5 = vadd.f32 %v2630_v27, %v2629_v1 }
 0x6a2   : > { %4074 = vtanh.f32 %v4835_v5 }
 0x6ac   : > { %v4075_v15 = vpop.eup %4074 }
 0x6ad   : > { %v2633_v32 = vmul.f32 %v4075_v15, %v4073_v12 }
 0x6af   : > { %2699 = vmatmul.mubr.f32.vlgmr.msra.gmra.mrb[4].mxu0 %v2633_v32  ;;  %2770 = vmatmul.mubr.f32.vlgmr.msra.gmra.mrb[20].mxu1 %v2633_v32 }
 0x6b0   : > { %3781 = vmatpush1.bf16.msra.mxu0 %v4415_v35  ;;  %3813 = vmatpush1.bf16.msra.mxu1 %v4504_v24 }
 0x6b1   : > { %3783 = vmatprep.subr.bf16.mxu0 %v4421_v38  ;;  %3815 = vmatprep.subr.bf16.mxu1 %v4508_v20 }
 0x6b2   : > { %2868 = vmatprep.mubr.f32.mxu0 %v4200_v9  ;;  %2939 = vmatprep.mubr.f32.mxu1 %v4200_v9 }
 0x6b4   : > { %3785 = vmatpush1.bf16.msra.mxu0 %v4429_v42  ;;  %3817 = vmatpush1.bf16.msra.mxu1 %v4515_v22 }
 0x6b5   : > { %3787 = vmatprep.subr.bf16.mxu0 %v4434_v45  ;;  %3819 = vmatprep.subr.bf16.mxu1 %v4519_v28 }
 0x6b8   : > { %3789 = vmatpush1.bf16.msra.mxu0 %v4440_v48  ;;  %3821 = vmatpush1.bf16.msra.mxu1 %v4525_v34 }
 0x6b9   : > { %3791 = vmatprep.subr.bf16.mxu0 %v4445_v51  ;;  %3823 = vmatprep.subr.bf16.mxu1 %v4528_v37 }
 0x6bc   : > { %3793 = vmatpush1.bf16.msra.mxu0 %v4451_v55  ;;  %3825 = vmatpush1.bf16.msra.mxu1 %v4533_v44 }
 0x6bd   : > { %3795 = vmatprep.subr.bf16.mxu0 %v4456_v58  ;;  %3827 = vmatprep.subr.bf16.mxu1 %v4536_v46 }
 0x6c0   : > { %3797 = vmatpush1.bf16.msra.mxu0 %v4461_v61  ;;  %3829 = vmatpush1.bf16.msra.mxu1 %v4541_v53 }
 0x6c1   : > { %3799 = vmatprep.subr.bf16.mxu0 %v4466_v0  ;;  %3831 = vmatprep.subr.bf16.mxu1 %v4544_v54 }
 0x6c4   : > { %3801 = vmatpush1.bf16.msra.mxu0 %v4471_v3  ;;  %3833 = vmatpush1.bf16.msra.mxu1 %v4549_v62 }
 0x6c5   : > { %3803 = vmatprep.subr.bf16.mxu0 %v4476_v6  ;;  %3835 = vmatprep.subr.bf16.mxu1 %v4552_v63  ;;  %v2975_v63 = vld [vmem:[%s4951_s4] sm:$0xff] }
 0x6c8   : > { %3805 = vmatpush1.bf16.msra.mxu0 %v4482_v10  ;;  %3837 = vmatpush1.bf16.msra.mxu1 %v4557_v7  ;;  %v2976_v7 = vld [vmem:[%s4951_s4 + $0x8] sm:$0xff] }
 0x6c9   : > { %3807 = vmatprep.subr.bf16.mxu0 %v4487_v13  ;;  %3839 = vmatprep.subr.bf16.mxu1 %v4560_v8  ;;  %v3843_v8 = vpack.c.bf16 %v2976_v7, %v2975_v63 }
 0x6cc   : > { %3809 = vmatpush1.bf16.msra.mxu0 %v4493_v16  ;;  %3841 = vmatpush1.bf16.msra.mxu1 %v4565_v14  ;;  %v4201_v14 = vmov 0.0|0.0  }
 0x6cd   : > { %3842 = vmatprep.subr.bf16.mxu0 %v4201_v14 }
 0x782   : > { %v2700_v35 = vpop.f32.mrb[4].mxu0  ;;  %v2771_v38 = vpop.f32.mrb[20].mxu1 }
 0x783   : > { %v3898_v42 = vadd.f32 %v2700_v35, %v4607_v39  ;;  %v2702_v45 = vpop.f32.mrb[5].mxu0  ;;  %v2773_v48 = vpop.f32.mrb[21].mxu1  ;;  %v3900_v61 = vadd.f32 %v2771_v38, %v4613_v4 }
 0x784   : > { %v3899_v51 = vadd.f32 %v2702_v45, %v4609_v40  ;;  %v3901_v0 = vadd.f32 %v2773_v48, %v4615_v11 }
 0x785   : > { %v3205_v55 = vmul.f32 -1.442695, %v3898_v42  ;;  %v3207_v3 = vmul.f32 -1.442695, %v3900_v61 }
 0x786   : > { %v3206_v58 = vmul.f32 -1.442695, %v3899_v51 }
 0x787   : > { %4076 = vpow2.f32 %v3205_v55 }
 0x788   : > { %4078 = vpow2.f32 %v3206_v58 }
 0x789   : > { %4080 = vtanh.f32 %v3901_v0 }
 0x78a   : > { %4082 = vpow2.f32 %v3207_v3 }
 0x791   : > { %v4077_v6 = vpop.eup %4076 }
 0x792   : > { %v2789_v10 = vadd.f32 1.0, %v4077_v6  ;;  %v4079_v13 = vpop.eup %4078 }
 0x793   : > { %v2790_v16 = vadd.f32 1.0, %v4079_v13  ;;  %v4081_v24 = vpop.eup %4080 }
 0x794   : > { %4084 = vrcp.f32 %v2789_v10  ;;  %v4083_v20 = vpop.eup %4082 }
 0x795   : > { %4086 = vrcp.f32 %v2790_v16  ;;  %v2791_v37 = vadd.f32 1.0, %v4083_v20  ;;  %v3211_v16 = vld [vmem:[#allocation2] ss:$0 sm:$0xff] }
 0x797   : > { %4088 = vrcp.f32 %v2791_v37 }
 0x79e   : > { %v4085_v22 = vpop.eup %4084 }
 0x79f   : > { %v2800_v28 = vmul.f32 %v4085_v22, %v4081_v24  ;;  %v4087_v34 = vpop.eup %4086 }
 0x7a0   : > { %v2799_v44 = vmul.f32 %v4087_v34, %v4835_v5 }
 0x7a1   : > { %v4089_v53 = vpop.eup %4088 }
 0x7a2   : > { %v4875_v46 = vadd.f32 %v2800_v28, %v2799_v44 }
 0x7a4   : > { %4090 = vtanh.f32 %v4875_v46 }
 0x7ae   : > { %v4091_v54 = vpop.eup %4090 }
 0x7af   : > { %v2803_v62 = vmul.f32 %v4091_v54, %v4089_v53 }
 0x7b1   : > { %2869 = vmatmul.mubr.f32.vlgmr.msra.gmra.mrb[6].mxu0 %v2803_v62  ;;  %2940 = vmatmul.mubr.f32.vlgmr.msra.gmra.mrb[22].mxu1 %v2803_v62 }
 0x7b2   : > { %3844 = vmatpush3.bf16.msra.mxu0 %v3843_v8  ;;  %3263 = vmatprep.mubr.msk.f32.mxu0 %vm4202_vm1, %v4200_v9 }
 0x7b3   : > { %3845 = vmatprep.subr.bf16.mxu0 %v4201_v14 }
 0x7b6   : > { %3847 = vmatpush3.bf16.msra.mxu0 %v3846_v36 }
 0x7b7   : > { %3848 = vmatprep.subr.bf16.mxu0 %v4201_v14 }
 0x7ba   : > { %3850 = vmatpush3.bf16.msra.mxu0 %v3849_v30 }
 0x7bb   : > { %3851 = vmatprep.subr.bf16.mxu0 %v4201_v14 }
 0x7be   : > { %3853 = vmatpush3.bf16.msra.mxu0 %v3852_v47 }
 0x7bf   : > { %3854 = vmatprep.subr.bf16.mxu0 %v4201_v14 }
 0x7c2   : > { %3856 = vmatpush3.bf16.msra.mxu0 %v3855_v21 }
 0x7c3   : > { %3857 = vmatprep.subr.bf16.mxu0 %v4201_v14 }
 0x7c6   : > { %3859 = vmatpush3.bf16.msra.mxu0 %v3858_v31 }
 0x7c7   : > { %3860 = vmatprep.subr.bf16.mxu0 %v4201_v14 }
 0x7ca   : > { %3862 = vmatpush3.bf16.msra.mxu0 %v3861_v56 }
 0x7cb   : > { %3863 = vmatprep.subr.bf16.mxu0 %v4201_v14 }
 0x7ce   : > { %3865 = vmatpush3.bf16.msra.mxu0 %v3864_v57 }
 0x884   : > { %v2870_v27 = vpop.f32.mrb[6].mxu0  ;;  %v2941_v59 = vpop.f32.mrb[22].mxu1 }
 0x885   : > { %v3902_v60 = vadd.f32 %v2870_v27, %v4607_v39  ;;  %v2872_v9 = vpop.f32.mrb[7].mxu0  ;;  %v2943_v1 = vpop.f32.mrb[23].mxu1  ;;  %v3904_v32 = vadd.f32 %v2941_v59, %v4613_v4 }
 0x886   : > { %v3903_v5 = vadd.f32 %v2872_v9, %v4609_v40  ;;  %v3905_v35 = vadd.f32 %v2943_v1, %v4615_v11 }
 0x887   : > { %v3208_v12 = vmul.f32 -1.442695, %v3902_v60  ;;  %v3210_v38 = vmul.f32 -1.442695, %v3904_v32 }
 0x888   : > { %v3209_v15 = vmul.f32 -1.442695, %v3903_v5 }
 0x889   : > { %4092 = vpow2.f32 %v3208_v12 }
 0x88a   : > { %4094 = vpow2.f32 %v3209_v15 }
 0x88b   : > { %4096 = vtanh.f32 %v3905_v35 }
 0x88c   : > { %4098 = vpow2.f32 %v3210_v38 }
 0x893   : > { %v4093_v42 = vpop.eup %4092 }
 0x894   : > { %v2959_v45 = vadd.f32 1.0, %v4093_v42  ;;  %v4095_v48 = vpop.eup %4094 }
 0x895   : > { %v2960_v39 = vadd.f32 1.0, %v4095_v48  ;;  %v4097_v51 = vpop.eup %4096 }
 0x896   : > { %4100 = vrcp.f32 %v2959_v45  ;;  %v4099_v40 = vpop.eup %4098 }
 0x897   : > { %4102 = vrcp.f32 %v2960_v39  ;;  %v2961_v0 = vadd.f32 1.0, %v4099_v40 }
 0x899   : > { %4104 = vrcp.f32 %v2961_v0 }
 0x8a0   : > { %v4101_v55 = vpop.eup %4100 }
 0x8a1   : > { %v2970_v58 = vmul.f32 %v4101_v55, %v4097_v51  ;;  %v4103_v61 = vpop.eup %4102 }
 0x8a2   : > { %v2969_v4 = vmul.f32 %v4103_v61, %v4875_v46 }
 0x8a3   : > { %v4105_v3 = vpop.eup %4104 }
 0x8a4   : > { %v2971_v11 = vadd.f32 %v2970_v58, %v2969_v4 }
 0x8a6   : > { %4106 = vtanh.f32 %v2971_v11 }
 0x8b0   : > { %v4107_v6 = vpop.eup %4106 }
 0x8b1   : > { %v2973_v10 = vmul.f32 %v4107_v6, %v4105_v3 }
 0x8b3   : > { %v2974_v13 = vmax.f32 %v2973_v10, 0.0 }
 0x8b5   : > { %3264 = vmatmul.mubr.f32.vlgmr.msra.gmra.mrb[16].mxu0 %v2974_v13 }
 0x988   : > { %v3064_v24 = vpop.f32.mrb[16].mxu0 }
 0x989   : > { %v3065_v20 = vadd.f32 %v3211_v16, %v3064_v24  ;;  %v3265_v22 = vpop.f32.mrb[17].mxu0 }
 0x98b   : > { %3069 = vst.msk [vmem:[%s343_s10] sm:$0xff] %vm3068_vm2, %v3065_v20 }
 0x98c PF: > { %p17_p0 = scmp.ge.s32.totalorder %s4260_s26, 4   ;;  %s4965_s23 = smov %s4190_s24 }
 0x98d   : > { %s4966_s24 = smov %s4270_s29  ;;  %s4967_s25 = smov %s4260_s26 }
 0x98e   :  { %19 = sbr.rel (!%p17_p0) target bundleno = 6 (0x6), region = 133 }
 0x995   :  { %3089 = vsyncpa [#allocation5], 1 }
 0x996   :  { %3091 = vsyncpa [#allocation5 + $0x1], 1 }
 0x997   :  { %3092 = vsyncpa [#allocation7], 1 }

</bundles_post_ra>
